<compile_context>
chip_gen: v7x
topology: tpu7x:2x2x1
jax: 0.10.0
libtpu: 0.0.40
codegen_flags: <defaults>
</compile_context>

<pallas_src>
import jax
import jax.numpy as jnp
from jax import lax
from jax.experimental import pallas as pl
from jax.experimental.pallas import tpu as pltpu


def _round_up(x, m):
    return (x + m - 1) // m * m


def _pick_batch_block(B, max_block=32):
    """Largest Bb <= max_block that divides B and is a multiple of 8 (or == B)."""
    for bb in range(min(B, max_block), 0, -1):
        if B % bb == 0 and (bb % 8 == 0 or bb == B):
            return bb
    return B


def decoder_kernel(emb_ref, h0_ref, enc_ref,
                   w_ih_ref, w_hh_ref, b_ih_ref, b_hh_ref,
                   w_att_ref, b_att_ref, w_fc_ref, b_fc_ref,
                   logits_ref, hidden_ref,
                   dec_scratch):
    # emb_ref    : (T, Bb, E)    time-major block of the embedded tokens
    # h0_ref     : (Bb, 2H)
    # enc_ref    : (Bb, S, 2H)
    # logits_ref : (Bb*T, Vpad)  lane-dense output block (rows = b*T + t)
    # hidden_ref : (Bb, 2H)
    # dec_scratch: (Bb*T, 2H)    batch-major staging of the GRU outputs
    T, Bb, _ = emb_ref.shape
    H2 = h0_ref.shape[1]

    w_ih = w_ih_ref[...]          # (E,  6H)
    w_hh = w_hh_ref[...]          # (2H, 6H)
    b_ih = b_ih_ref[...]          # (1,  6H)
    b_hh = b_hh_ref[...]          # (1,  6H)

    # ---- Hoisted input projection (feedback #1): no dependence on h, so all T
    # projections are issued up front, outside the serial recurrence.
    gxs = [jnp.dot(emb_ref[t], w_ih, preferred_element_type=jnp.float32) + b_ih
           for t in range(T)]                                   # T x (Bb, 6H)

    # ---- GRU recurrence, fully unrolled over the static T axis (feedback #3).
    # PyTorch gate order [r, z, n].
    h = h0_ref[...]                                             # (Bb, 2H)
    for t in range(T):
        gx = gxs[t]
        gh = jnp.dot(h, w_hh, preferred_element_type=jnp.float32) + b_hh
        r = jax.nn.sigmoid(gx[:, :H2] + gh[:, :H2])
        z = jax.nn.sigmoid(gx[:, H2:2 * H2] + gh[:, H2:2 * H2])
        n = jnp.tanh(gx[:, 2 * H2:] + r * gh[:, 2 * H2:])
        h = (1.0 - z) * n + z * h                               # (Bb, 2H)
        # Stage batch-major so the per-batch attention below reads contiguous rows.
        for b in range(Bb):
            dec_scratch[pl.ds(b * T + t, 1), :] = h[b:b + 1, :]
    hidden_ref[...] = h                                         # (Bb, 2H)

    # ---- Attention + output head (everything stays rank-2, transpose-free).
    w_att_c = w_att_ref[:H2, :]                                 # (2H, 2H) * c_t
    w_att_d = w_att_ref[H2:, :]                                 # (2H, 2H) * dec
    b_att = b_att_ref[...]                                      # (1, 2H)
    w_fc = w_fc_ref[...]                                        # (2H, Vpad)
    b_fc = b_fc_ref[...]                                        # (1, Vpad)

    for b in range(Bb):
        enc_b = enc_ref[b]                                      # (S, 2H)
        dec_b = dec_scratch[pl.ds(b * T, T), :]                 # (T, 2H)
        # Scores computed directly in (T, S) layout: contracting the feature dim
        # on both operands (feedback #4); softmax reduction lands on the lane axis.
        s_ts = lax.dot_general(dec_b, enc_b, (((1,), (1,)), ((), ())),
                               preferred_element_type=jnp.float32)   # (T, S)
        s_max = jnp.max(s_ts, axis=1, keepdims=True)
        e = jnp.exp(s_ts - s_max)
        denom = jnp.sum(e, axis=1, keepdims=True)
        p = e * pl.reciprocal(denom, approx=True)               # softmax over S
        c_b = jnp.dot(p, enc_b, preferred_element_type=jnp.float32)  # (T, 2H)
        # tanh(attention_fc(cat([c, dec], -1))): concat folded into two matmuls
        # on the split weight matrix.
        out_b = jnp.tanh(jnp.dot(c_b, w_att_c, preferred_element_type=jnp.float32)
                         + jnp.dot(dec_b, w_att_d, preferred_element_type=jnp.float32)
                         + b_att)
        logits_b = jnp.dot(out_b, w_fc, preferred_element_type=jnp.float32) + b_fc
        logits_ref[pl.ds(b * T, T), :] = logits_b               # lane-dense store


def decoder_forward(token_seq, hidden_state, enc_output, params, *, batch_block=None):
    (emb_table, w_ih, w_hh, b_ih, b_hh, w_att, b_att, w_fc, b_fc) = params
    B, T = token_seq.shape
    E = emb_table.shape[1]
    S = enc_output.shape[1]
    H2 = hidden_state.shape[-1]
    V = w_fc.shape[1]

    Bb = batch_block if batch_block is not None else _pick_batch_block(B)
    assert B % Bb == 0

    # Lane-dense logits (feedback #5): pad the vocab axis to a multiple of 128 with
    # zero columns; slice the padding away after the call.
    Vp = max(_round_up(V, 128), 128)
    w_fc_p = jnp.pad(w_fc, ((0, 0), (0, Vp - V)))
    b_fc_p = jnp.pad(b_fc, ((0, 0), (0, Vp - V)))

    # Embedding gather stays as XLA glue (review item #11 is optional); produced
    # time-major so the kernel's per-step read emb_ref[t] is a contiguous tile.
    emb_tm = emb_table[token_seq.T].astype(jnp.float32)         # (T, B, E)
    h0_2d = hidden_state[0].astype(jnp.float32)                 # (B, 2H)

    logits2d, hidden2d = pl.pallas_call(
        decoder_kernel,
        out_shape=(jax.ShapeDtypeStruct((B * T, Vp), jnp.float32),
                   jax.ShapeDtypeStruct((B, H2), jnp.float32)),
        grid_spec=pltpu.PrefetchScalarGridSpec(
            num_scalar_prefetch=0,
            grid=(B // Bb,),                                    # feedback #2: Bb rows / step
            in_specs=[
                pl.BlockSpec((T, Bb, E), lambda g: (0, g, 0)),      # embedded (time-major)
                pl.BlockSpec((Bb, H2), lambda g: (g, 0)),           # h0
                pl.BlockSpec((Bb, S, H2), lambda g: (g, 0, 0)),     # enc_output
                pl.BlockSpec((E, 3 * H2), lambda g: (0, 0)),        # W_ih
                pl.BlockSpec((H2, 3 * H2), lambda g: (0, 0)),       # W_hh
                pl.BlockSpec((1, 3 * H2), lambda g: (0, 0)),        # b_ih
                pl.BlockSpec((1, 3 * H2), lambda g: (0, 0)),        # b_hh
                pl.BlockSpec((2 * H2, H2), lambda g: (0, 0)),       # attention_fc W
                pl.BlockSpec((1, H2), lambda g: (0, 0)),            # attention_fc b
                pl.BlockSpec((H2, Vp), lambda g: (0, 0)),           # fc W (vocab-padded)
                pl.BlockSpec((1, Vp), lambda g: (0, 0)),            # fc b (vocab-padded)
            ],
            out_specs=[
                pl.BlockSpec((Bb * T, Vp), lambda g: (g, 0)),       # logits (lane-dense)
                pl.BlockSpec((Bb, H2), lambda g: (g, 0)),           # hidden
            ],
            scratch_shapes=[pltpu.VMEM((Bb * T, H2), jnp.float32)], # dec_output staging
        ),
        compiler_params=pltpu.CompilerParams(
            dimension_semantics=("parallel",),      # batch blocks independent (v7x 2 TCs)
            vmem_limit_bytes=32 * 1024 * 1024,
        ),
    )(emb_tm, h0_2d, enc_output.astype(jnp.float32),
      w_ih, w_hh, b_ih, b_hh, w_att, b_att, w_fc_p, b_fc_p)

    logits = logits2d.reshape(B, T, Vp)[:, :, :V]               # drop vocab padding
    hidden = hidden2d[None, :, :]                               # (1, B, 2H) like PyTorch
    return logits, hidden


def decoder_reference(token_seq, hidden_state, enc_output, params):
    """Pure-JAX reference mirroring the PyTorch forward."""
    (emb_table, w_ih, w_hh, b_ih, b_hh, w_att, b_att, w_fc, b_fc) = params
    embedded = emb_table[token_seq]
    H2 = hidden_state.shape[-1]

    def gru_step(h, x):
        gx = x @ w_ih + b_ih[0]
        gh = h @ w_hh + b_hh[0]
        r = jax.nn.sigmoid(gx[:, :H2] + gh[:, :H2])
        z = jax.nn.sigmoid(gx[:, H2:2 * H2] + gh[:, H2:2 * H2])
        n = jnp.tanh(gx[:, 2 * H2:] + r * gh[:, 2 * H2:])
        h_new = (1.0 - z) * n + z * h
        return h_new, h_new

    h_last, dec = lax.scan(gru_step, hidden_state[0],
                           jnp.transpose(embedded, (1, 0, 2)))
    dec = jnp.transpose(dec, (1, 0, 2))                          # (B, T, 2H)
    a = jnp.einsum('bsh,bth->bst', enc_output, dec)
    p = jax.nn.softmax(a, axis=1)
    c = jnp.einsum('bst,bsh->bth', p, enc_output)
    out = jnp.tanh(jnp.concatenate([c, dec], axis=-1) @ w_att + b_att[0])
    logits = out @ w_fc + b_fc[0]
    return logits, h_last[None]


if __name__ == "__main__":
    key = jax.random.PRNGKey(0)
    V, E, H = 16, 8, 16          # input_dim (vocab), emb_dim, hidden_dim
    H2 = 2 * H                   # GRU hidden size = hidden_dim * 2
    B, T, S = 2, 8, 8            # batch, decoder seq len, encoder seq len

    ks = jax.random.split(key, 12)
    emb_table = jax.random.normal(ks[0], (V, E), jnp.float32) * 0.1
    w_ih = jax.random.normal(ks[1], (E, 3 * H2), jnp.float32) * 0.1
    w_hh = jax.random.normal(ks[2], (H2, 3 * H2), jnp.float32) * 0.1
    b_ih = jax.random.normal(ks[3], (1, 3 * H2), jnp.float32) * 0.1
    b_hh = jax.random.normal(ks[4], (1, 3 * H2), jnp.float32) * 0.1
    w_att = jax.random.normal(ks[5], (2 * H2, H2), jnp.float32) * 0.1
    b_att = jax.random.normal(ks[6], (1, H2), jnp.float32) * 0.1
    w_fc = jax.random.normal(ks[7], (H2, V), jnp.float32) * 0.1
    b_fc = jax.random.normal(ks[8], (1, V), jnp.float32) * 0.1
    params = (emb_table, w_ih, w_hh, b_ih, b_hh, w_att, b_att, w_fc, b_fc)

    token_seq = jax.random.randint(ks[9], (B, T), 0, V, dtype=jnp.int32)
    hidden_state = jax.random.normal(ks[10], (1, B, H2), jnp.float32)
    enc_output = jax.random.normal(ks[11], (B, S, H2), jnp.float32)

    logits, hidden = decoder_forward(token_seq, hidden_state, enc_output, params)
    jax.block_until_ready((logits, hidden))

    logits_r, hidden_r = decoder_reference(token_seq, hidden_state, enc_output, params)
    assert logits.shape == (B, T, V) and hidden.shape == (1, B, H2)
    # hidden follows the exact f32 path; logits use the EUP approx reciprocal in
    # the softmax, so their tolerance is slightly relaxed.
    assert jnp.allclose(hidden, hidden_r, atol=1e-4, rtol=1e-4)
    assert jnp.allclose(logits, logits_r, atol=5e-3, rtol=5e-3)
    print("KERNEL_OK")
</pallas_src>

<mosaic_0001>
module attributes {stable_mosaic.version = 11 : i64} {
  func.func @decoder_kernel(%arg0: i32, %arg1: memref<8x2x8xf32, #tpu.memory_space<vmem>>, %arg2: memref<2x32xf32, #tpu.memory_space<vmem>>, %arg3: memref<2x8x32xf32, #tpu.memory_space<vmem>>, %arg4: memref<8x96xf32, #tpu.memory_space<vmem>>, %arg5: memref<32x96xf32, #tpu.memory_space<vmem>>, %arg6: memref<1x96xf32, #tpu.memory_space<vmem>>, %arg7: memref<1x96xf32, #tpu.memory_space<vmem>>, %arg8: memref<64x32xf32, #tpu.memory_space<vmem>>, %arg9: memref<1x32xf32, #tpu.memory_space<vmem>>, %arg10: memref<32x128xf32, #tpu.memory_space<vmem>>, %arg11: memref<1x128xf32, #tpu.memory_space<vmem>>, %arg12: memref<16x128xf32, #tpu.memory_space<vmem>>, %arg13: memref<2x32xf32, #tpu.memory_space<vmem>>, %arg14: memref<16x32xf32, #tpu.memory_space<vmem>>) attributes {dimension_semantics = [#tpu.dimension_semantics<parallel>], iteration_bounds = array<i64: 1>, scalar_prefetch = 0 : i64, scratch_operands = 1 : i64, tpu.core_type = #tpu.core_type<tc>, window_params = [{transform_indices = @transform_0, window_bounds = array<i64: 8, 2, 8>}, {transform_indices = @transform_1, window_bounds = array<i64: 2, 32>}, {transform_indices = @transform_2, window_bounds = array<i64: 2, 8, 32>}, {pipeline_mode = #tpu.pipeline_mode<synchronous>, transform_indices = @transform_3, window_bounds = array<i64: 8, 96>}, {pipeline_mode = #tpu.pipeline_mode<synchronous>, transform_indices = @transform_4, window_bounds = array<i64: 32, 96>}, {pipeline_mode = #tpu.pipeline_mode<synchronous>, transform_indices = @transform_5, window_bounds = array<i64: 1, 96>}, {pipeline_mode = #tpu.pipeline_mode<synchronous>, transform_indices = @transform_6, window_bounds = array<i64: 1, 96>}, {pipeline_mode = #tpu.pipeline_mode<synchronous>, transform_indices = @transform_7, window_bounds = array<i64: 64, 32>}, {pipeline_mode = #tpu.pipeline_mode<synchronous>, transform_indices = @transform_8, window_bounds = array<i64: 1, 32>}, {pipeline_mode = #tpu.pipeline_mode<synchronous>, transform_indices = @transform_9, window_bounds = array<i64: 32, 128>}, {pipeline_mode = #tpu.pipeline_mode<synchronous>, transform_indices = @transform_10, window_bounds = array<i64: 1, 128>}, {transform_indices = @transform_11, window_bounds = array<i64: 16, 128>}, {transform_indices = @transform_12, window_bounds = array<i64: 2, 32>}]} {
    %c0 = arith.constant 0 : index
    %c0_0 = arith.constant 0 : index
    %0 = vector.load %arg4[%c0, %c0_0] : memref<8x96xf32, #tpu.memory_space<vmem>>, vector<8x96xf32>
    %c0_1 = arith.constant 0 : index
    %c0_2 = arith.constant 0 : index
    %1 = vector.load %arg5[%c0_1, %c0_2] : memref<32x96xf32, #tpu.memory_space<vmem>>, vector<32x96xf32>
    %c0_3 = arith.constant 0 : index
    %c0_4 = arith.constant 0 : index
    %2 = vector.load %arg6[%c0_3, %c0_4] : memref<1x96xf32, #tpu.memory_space<vmem>>, vector<1x96xf32>
    %c0_5 = arith.constant 0 : index
    %c0_6 = arith.constant 0 : index
    %3 = vector.load %arg7[%c0_5, %c0_6] : memref<1x96xf32, #tpu.memory_space<vmem>>, vector<1x96xf32>
    %c0_7 = arith.constant 0 : index
    %c0_8 = arith.constant 0 : index
    %c0_9 = arith.constant 0 : index
    %4 = vector.load %arg1[%c0_7, %c0_8, %c0_9] : memref<8x2x8xf32, #tpu.memory_space<vmem>>, vector<1x2x8xf32>
    %5 = vector.shape_cast %4 : vector<1x2x8xf32> to vector<2x8xf32>
    %cst = arith.constant dense<0.000000e+00> : vector<2x96xf32>
    %6 = tpu.matmul %5, %0, %cst {dimension_numbers = #tpu.dot_dimension_numbers<[1], [0], [0], [1], [0, 0, 1, 1], [], []>} : vector<2x8xf32>, vector<8x96xf32>, vector<2x96xf32> -> vector<2x96xf32>
    %7 = vector.broadcast %2 : vector<1x96xf32> to vector<2x96xf32>
    %8 = arith.addf %6, %7 : vector<2x96xf32>
    %c1 = arith.constant 1 : index
    %c0_10 = arith.constant 0 : index
    %c0_11 = arith.constant 0 : index
    %9 = vector.load %arg1[%c1, %c0_10, %c0_11] : memref<8x2x8xf32, #tpu.memory_space<vmem>>, vector<1x2x8xf32>
    %10 = vector.shape_cast %9 : vector<1x2x8xf32> to vector<2x8xf32>
    %cst_12 = arith.constant dense<0.000000e+00> : vector<2x96xf32>
    %11 = tpu.matmul %10, %0, %cst_12 {dimension_numbers = #tpu.dot_dimension_numbers<[1], [0], [0], [1], [0, 0, 1, 1], [], []>} : vector<2x8xf32>, vector<8x96xf32>, vector<2x96xf32> -> vector<2x96xf32>
    %12 = vector.broadcast %2 : vector<1x96xf32> to vector<2x96xf32>
    %13 = arith.addf %11, %12 : vector<2x96xf32>
    %c2 = arith.constant 2 : index
    %c0_13 = arith.constant 0 : index
    %c0_14 = arith.constant 0 : index
    %14 = vector.load %arg1[%c2, %c0_13, %c0_14] : memref<8x2x8xf32, #tpu.memory_space<vmem>>, vector<1x2x8xf32>
    %15 = vector.shape_cast %14 : vector<1x2x8xf32> to vector<2x8xf32>
    %cst_15 = arith.constant dense<0.000000e+00> : vector<2x96xf32>
    %16 = tpu.matmul %15, %0, %cst_15 {dimension_numbers = #tpu.dot_dimension_numbers<[1], [0], [0], [1], [0, 0, 1, 1], [], []>} : vector<2x8xf32>, vector<8x96xf32>, vector<2x96xf32> -> vector<2x96xf32>
    %17 = vector.broadcast %2 : vector<1x96xf32> to vector<2x96xf32>
    %18 = arith.addf %16, %17 : vector<2x96xf32>
    %c3 = arith.constant 3 : index
    %c0_16 = arith.constant 0 : index
    %c0_17 = arith.constant 0 : index
    %19 = vector.load %arg1[%c3, %c0_16, %c0_17] : memref<8x2x8xf32, #tpu.memory_space<vmem>>, vector<1x2x8xf32>
    %20 = vector.shape_cast %19 : vector<1x2x8xf32> to vector<2x8xf32>
    %cst_18 = arith.constant dense<0.000000e+00> : vector<2x96xf32>
    %21 = tpu.matmul %20, %0, %cst_18 {dimension_numbers = #tpu.dot_dimension_numbers<[1], [0], [0], [1], [0, 0, 1, 1], [], []>} : vector<2x8xf32>, vector<8x96xf32>, vector<2x96xf32> -> vector<2x96xf32>
    %22 = vector.broadcast %2 : vector<1x96xf32> to vector<2x96xf32>
    %23 = arith.addf %21, %22 : vector<2x96xf32>
    %c4 = arith.constant 4 : index
    %c0_19 = arith.constant 0 : index
    %c0_20 = arith.constant 0 : index
    %24 = vector.load %arg1[%c4, %c0_19, %c0_20] : memref<8x2x8xf32, #tpu.memory_space<vmem>>, vector<1x2x8xf32>
    %25 = vector.shape_cast %24 : vector<1x2x8xf32> to vector<2x8xf32>
    %cst_21 = arith.constant dense<0.000000e+00> : vector<2x96xf32>
    %26 = tpu.matmul %25, %0, %cst_21 {dimension_numbers = #tpu.dot_dimension_numbers<[1], [0], [0], [1], [0, 0, 1, 1], [], []>} : vector<2x8xf32>, vector<8x96xf32>, vector<2x96xf32> -> vector<2x96xf32>
    %27 = vector.broadcast %2 : vector<1x96xf32> to vector<2x96xf32>
    %28 = arith.addf %26, %27 : vector<2x96xf32>
    %c5 = arith.constant 5 : index
    %c0_22 = arith.constant 0 : index
    %c0_23 = arith.constant 0 : index
    %29 = vector.load %arg1[%c5, %c0_22, %c0_23] : memref<8x2x8xf32, #tpu.memory_space<vmem>>, vector<1x2x8xf32>
    %30 = vector.shape_cast %29 : vector<1x2x8xf32> to vector<2x8xf32>
    %cst_24 = arith.constant dense<0.000000e+00> : vector<2x96xf32>
    %31 = tpu.matmul %30, %0, %cst_24 {dimension_numbers = #tpu.dot_dimension_numbers<[1], [0], [0], [1], [0, 0, 1, 1], [], []>} : vector<2x8xf32>, vector<8x96xf32>, vector<2x96xf32> -> vector<2x96xf32>
    %32 = vector.broadcast %2 : vector<1x96xf32> to vector<2x96xf32>
    %33 = arith.addf %31, %32 : vector<2x96xf32>
    %c6 = arith.constant 6 : index
    %c0_25 = arith.constant 0 : index
    %c0_26 = arith.constant 0 : index
    %34 = vector.load %arg1[%c6, %c0_25, %c0_26] : memref<8x2x8xf32, #tpu.memory_space<vmem>>, vector<1x2x8xf32>
    %35 = vector.shape_cast %34 : vector<1x2x8xf32> to vector<2x8xf32>
    %cst_27 = arith.constant dense<0.000000e+00> : vector<2x96xf32>
    %36 = tpu.matmul %35, %0, %cst_27 {dimension_numbers = #tpu.dot_dimension_numbers<[1], [0], [0], [1], [0, 0, 1, 1], [], []>} : vector<2x8xf32>, vector<8x96xf32>, vector<2x96xf32> -> vector<2x96xf32>
    %37 = vector.broadcast %2 : vector<1x96xf32> to vector<2x96xf32>
    %38 = arith.addf %36, %37 : vector<2x96xf32>
    %c7 = arith.constant 7 : index
    %c0_28 = arith.constant 0 : index
    %c0_29 = arith.constant 0 : index
    %39 = vector.load %arg1[%c7, %c0_28, %c0_29] : memref<8x2x8xf32, #tpu.memory_space<vmem>>, vector<1x2x8xf32>
    %40 = vector.shape_cast %39 : vector<1x2x8xf32> to vector<2x8xf32>
    %cst_30 = arith.constant dense<0.000000e+00> : vector<2x96xf32>
    %41 = tpu.matmul %40, %0, %cst_30 {dimension_numbers = #tpu.dot_dimension_numbers<[1], [0], [0], [1], [0, 0, 1, 1], [], []>} : vector<2x8xf32>, vector<8x96xf32>, vector<2x96xf32> -> vector<2x96xf32>
    %42 = vector.broadcast %2 : vector<1x96xf32> to vector<2x96xf32>
    %43 = arith.addf %41, %42 : vector<2x96xf32>
    %c0_31 = arith.constant 0 : index
    %c0_32 = arith.constant 0 : index
    %44 = vector.load %arg2[%c0_31, %c0_32] : memref<2x32xf32, #tpu.memory_space<vmem>>, vector<2x32xf32>
    %cst_33 = arith.constant dense<0.000000e+00> : vector<2x96xf32>
    %45 = tpu.matmul %44, %1, %cst_33 {dimension_numbers = #tpu.dot_dimension_numbers<[1], [0], [0], [1], [0, 0, 1, 1], [], []>} : vector<2x32xf32>, vector<32x96xf32>, vector<2x96xf32> -> vector<2x96xf32>
    %46 = vector.broadcast %3 : vector<1x96xf32> to vector<2x96xf32>
    %47 = arith.addf %45, %46 : vector<2x96xf32>
    %48 = vector.extract_strided_slice %8 {offsets = [0, 0], sizes = [2, 32], strides = [1, 1]} : vector<2x96xf32> to vector<2x32xf32>
    %49 = vector.extract_strided_slice %47 {offsets = [0, 0], sizes = [2, 32], strides = [1, 1]} : vector<2x96xf32> to vector<2x32xf32>
    %50 = arith.addf %48, %49 : vector<2x32xf32>
    %51 = arith.negf %50 : vector<2x32xf32>
    %52 = math.exp %51 : vector<2x32xf32>
    %cst_34 = arith.constant 1.000000e+00 : f32
    %53 = vector.broadcast %cst_34 : f32 to vector<2x32xf32>
    %54 = arith.addf %53, %52 : vector<2x32xf32>
    %55 = arith.divf %53, %54 : vector<2x32xf32>
    %56 = vector.extract_strided_slice %8 {offsets = [0, 32], sizes = [2, 32], strides = [1, 1]} : vector<2x96xf32> to vector<2x32xf32>
    %57 = vector.extract_strided_slice %47 {offsets = [0, 32], sizes = [2, 32], strides = [1, 1]} : vector<2x96xf32> to vector<2x32xf32>
    %58 = arith.addf %56, %57 : vector<2x32xf32>
    %59 = arith.negf %58 : vector<2x32xf32>
    %60 = math.exp %59 : vector<2x32xf32>
    %cst_35 = arith.constant 1.000000e+00 : f32
    %61 = vector.broadcast %cst_35 : f32 to vector<2x32xf32>
    %62 = arith.addf %61, %60 : vector<2x32xf32>
    %63 = arith.divf %61, %62 : vector<2x32xf32>
    %64 = vector.extract_strided_slice %8 {offsets = [0, 64], sizes = [2, 32], strides = [1, 1]} : vector<2x96xf32> to vector<2x32xf32>
    %65 = vector.extract_strided_slice %47 {offsets = [0, 64], sizes = [2, 32], strides = [1, 1]} : vector<2x96xf32> to vector<2x32xf32>
    %66 = arith.mulf %55, %65 : vector<2x32xf32>
    %67 = arith.addf %64, %66 : vector<2x32xf32>
    %68 = math.tanh %67 : vector<2x32xf32>
    %cst_36 = arith.constant 1.000000e+00 : f32
    %69 = vector.broadcast %cst_36 : f32 to vector<2x32xf32>
    %70 = arith.subf %69, %63 : vector<2x32xf32>
    %71 = arith.mulf %70, %68 : vector<2x32xf32>
    %72 = arith.mulf %63, %44 : vector<2x32xf32>
    %73 = arith.addf %71, %72 : vector<2x32xf32>
    %74 = vector.extract_strided_slice %73 {offsets = [0, 0], sizes = [1, 32], strides = [1, 1]} : vector<2x32xf32> to vector<1x32xf32>
    %c0_37 = arith.constant 0 : index
    %c0_38 = arith.constant 0 : index
    %75 = vector.load %arg14[%c0_37, %c0_38] : memref<16x32xf32, #tpu.memory_space<vmem>>, vector<1x32xf32>
    tpu.vector_store %arg14[%c0_37, %c0_38], %74 {strides = array<i32>} : memref<16x32xf32, #tpu.memory_space<vmem>>, vector<1x32xf32>,
    %76 = vector.extract_strided_slice %73 {offsets = [1, 0], sizes = [1, 32], strides = [1, 1]} : vector<2x32xf32> to vector<1x32xf32>
    %c8 = arith.constant 8 : index
    %c0_39 = arith.constant 0 : index
    %77 = vector.load %arg14[%c8, %c0_39] : memref<16x32xf32, #tpu.memory_space<vmem>>, vector<1x32xf32>
    tpu.vector_store %arg14[%c8, %c0_39], %76 {strides = array<i32>} : memref<16x32xf32, #tpu.memory_space<vmem>>, vector<1x32xf32>,
    %cst_40 = arith.constant dense<0.000000e+00> : vector<2x96xf32>
    %78 = tpu.matmul %73, %1, %cst_40 {dimension_numbers = #tpu.dot_dimension_numbers<[1], [0], [0], [1], [0, 0, 1, 1], [], []>} : vector<2x32xf32>, vector<32x96xf32>, vector<2x96xf32> -> vector<2x96xf32>
    %79 = vector.broadcast %3 : vector<1x96xf32> to vector<2x96xf32>
    %80 = arith.addf %78, %79 : vector<2x96xf32>
    %81 = vector.extract_strided_slice %13 {offsets = [0, 0], sizes = [2, 32], strides = [1, 1]} : vector<2x96xf32> to vector<2x32xf32>
    %82 = vector.extract_strided_slice %80 {offsets = [0, 0], sizes = [2, 32], strides = [1, 1]} : vector<2x96xf32> to vector<2x32xf32>
    %83 = arith.addf %81, %82 : vector<2x32xf32>
    %84 = arith.negf %83 : vector<2x32xf32>
    %85 = math.exp %84 : vector<2x32xf32>
    %cst_41 = arith.constant 1.000000e+00 : f32
    %86 = vector.broadcast %cst_41 : f32 to vector<2x32xf32>
    %87 = arith.addf %86, %85 : vector<2x32xf32>
    %88 = arith.divf %86, %87 : vector<2x32xf32>
    %89 = vector.extract_strided_slice %13 {offsets = [0, 32], sizes = [2, 32], strides = [1, 1]} : vector<2x96xf32> to vector<2x32xf32>
    %90 = vector.extract_strided_slice %80 {offsets = [0, 32], sizes = [2, 32], strides = [1, 1]} : vector<2x96xf32> to vector<2x32xf32>
    %91 = arith.addf %89, %90 : vector<2x32xf32>
    %92 = arith.negf %91 : vector<2x32xf32>
    %93 = math.exp %92 : vector<2x32xf32>
    %cst_42 = arith.constant 1.000000e+00 : f32
    %94 = vector.broadcast %cst_42 : f32 to vector<2x32xf32>
    %95 = arith.addf %94, %93 : vector<2x32xf32>
    %96 = arith.divf %94, %95 : vector<2x32xf32>
    %97 = vector.extract_strided_slice %13 {offsets = [0, 64], sizes = [2, 32], strides = [1, 1]} : vector<2x96xf32> to vector<2x32xf32>
    %98 = vector.extract_strided_slice %80 {offsets = [0, 64], sizes = [2, 32], strides = [1, 1]} : vector<2x96xf32> to vector<2x32xf32>
    %99 = arith.mulf %88, %98 : vector<2x32xf32>
    %100 = arith.addf %97, %99 : vector<2x32xf32>
    %101 = math.tanh %100 : vector<2x32xf32>
    %cst_43 = arith.constant 1.000000e+00 : f32
    %102 = vector.broadcast %cst_43 : f32 to vector<2x32xf32>
    %103 = arith.subf %102, %96 : vector<2x32xf32>
    %104 = arith.mulf %103, %101 : vector<2x32xf32>
    %105 = arith.mulf %96, %73 : vector<2x32xf32>
    %106 = arith.addf %104, %105 : vector<2x32xf32>
    %107 = vector.extract_strided_slice %106 {offsets = [0, 0], sizes = [1, 32], strides = [1, 1]} : vector<2x32xf32> to vector<1x32xf32>
    %c1_44 = arith.constant 1 : index
    %c0_45 = arith.constant 0 : index
    %108 = vector.load %arg14[%c1_44, %c0_45] : memref<16x32xf32, #tpu.memory_space<vmem>>, vector<1x32xf32>
    tpu.vector_store %arg14[%c1_44, %c0_45], %107 {strides = array<i32>} : memref<16x32xf32, #tpu.memory_space<vmem>>, vector<1x32xf32>,
    %109 = vector.extract_strided_slice %106 {offsets = [1, 0], sizes = [1, 32], strides = [1, 1]} : vector<2x32xf32> to vector<1x32xf32>
    %c9 = arith.constant 9 : index
    %c0_46 = arith.constant 0 : index
    %110 = vector.load %arg14[%c9, %c0_46] : memref<16x32xf32, #tpu.memory_space<vmem>>, vector<1x32xf32>
    tpu.vector_store %arg14[%c9, %c0_46], %109 {strides = array<i32>} : memref<16x32xf32, #tpu.memory_space<vmem>>, vector<1x32xf32>,
    %cst_47 = arith.constant dense<0.000000e+00> : vector<2x96xf32>
    %111 = tpu.matmul %106, %1, %cst_47 {dimension_numbers = #tpu.dot_dimension_numbers<[1], [0], [0], [1], [0, 0, 1, 1], [], []>} : vector<2x32xf32>, vector<32x96xf32>, vector<2x96xf32> -> vector<2x96xf32>
    %112 = vector.broadcast %3 : vector<1x96xf32> to vector<2x96xf32>
    %113 = arith.addf %111, %112 : vector<2x96xf32>
    %114 = vector.extract_strided_slice %18 {offsets = [0, 0], sizes = [2, 32], strides = [1, 1]} : vector<2x96xf32> to vector<2x32xf32>
    %115 = vector.extract_strided_slice %113 {offsets = [0, 0], sizes = [2, 32], strides = [1, 1]} : vector<2x96xf32> to vector<2x32xf32>
    %116 = arith.addf %114, %115 : vector<2x32xf32>
    %117 = arith.negf %116 : vector<2x32xf32>
    %118 = math.exp %117 : vector<2x32xf32>
    %cst_48 = arith.constant 1.000000e+00 : f32
    %119 = vector.broadcast %cst_48 : f32 to vector<2x32xf32>
    %120 = arith.addf %119, %118 : vector<2x32xf32>
    %121 = arith.divf %119, %120 : vector<2x32xf32>
    %122 = vector.extract_strided_slice %18 {offsets = [0, 32], sizes = [2, 32], strides = [1, 1]} : vector<2x96xf32> to vector<2x32xf32>
    %123 = vector.extract_strided_slice %113 {offsets = [0, 32], sizes = [2, 32], strides = [1, 1]} : vector<2x96xf32> to vector<2x32xf32>
    %124 = arith.addf %122, %123 : vector<2x32xf32>
    %125 = arith.negf %124 : vector<2x32xf32>
    %126 = math.exp %125 : vector<2x32xf32>
    %cst_49 = arith.constant 1.000000e+00 : f32
    %127 = vector.broadcast %cst_49 : f32 to vector<2x32xf32>
    %128 = arith.addf %127, %126 : vector<2x32xf32>
    %129 = arith.divf %127, %128 : vector<2x32xf32>
    %130 = vector.extract_strided_slice %18 {offsets = [0, 64], sizes = [2, 32], strides = [1, 1]} : vector<2x96xf32> to vector<2x32xf32>
    %131 = vector.extract_strided_slice %113 {offsets = [0, 64], sizes = [2, 32], strides = [1, 1]} : vector<2x96xf32> to vector<2x32xf32>
    %132 = arith.mulf %121, %131 : vector<2x32xf32>
    %133 = arith.addf %130, %132 : vector<2x32xf32>
    %134 = math.tanh %133 : vector<2x32xf32>
    %cst_50 = arith.constant 1.000000e+00 : f32
    %135 = vector.broadcast %cst_50 : f32 to vector<2x32xf32>
    %136 = arith.subf %135, %129 : vector<2x32xf32>
    %137 = arith.mulf %136, %134 : vector<2x32xf32>
    %138 = arith.mulf %129, %106 : vector<2x32xf32>
    %139 = arith.addf %137, %138 : vector<2x32xf32>
    %140 = vector.extract_strided_slice %139 {offsets = [0, 0], sizes = [1, 32], strides = [1, 1]} : vector<2x32xf32> to vector<1x32xf32>
    %c2_51 = arith.constant 2 : index
    %c0_52 = arith.constant 0 : index
    %141 = vector.load %arg14[%c2_51, %c0_52] : memref<16x32xf32, #tpu.memory_space<vmem>>, vector<1x32xf32>
    tpu.vector_store %arg14[%c2_51, %c0_52], %140 {strides = array<i32>} : memref<16x32xf32, #tpu.memory_space<vmem>>, vector<1x32xf32>,
    %142 = vector.extract_strided_slice %139 {offsets = [1, 0], sizes = [1, 32], strides = [1, 1]} : vector<2x32xf32> to vector<1x32xf32>
    %c10 = arith.constant 10 : index
    %c0_53 = arith.constant 0 : index
    %143 = vector.load %arg14[%c10, %c0_53] : memref<16x32xf32, #tpu.memory_space<vmem>>, vector<1x32xf32>
    tpu.vector_store %arg14[%c10, %c0_53], %142 {strides = array<i32>} : memref<16x32xf32, #tpu.memory_space<vmem>>, vector<1x32xf32>,
    %cst_54 = arith.constant dense<0.000000e+00> : vector<2x96xf32>
    %144 = tpu.matmul %139, %1, %cst_54 {dimension_numbers = #tpu.dot_dimension_numbers<[1], [0], [0], [1], [0, 0, 1, 1], [], []>} : vector<2x32xf32>, vector<32x96xf32>, vector<2x96xf32> -> vector<2x96xf32>
    %145 = vector.broadcast %3 : vector<1x96xf32> to vector<2x96xf32>
    %146 = arith.addf %144, %145 : vector<2x96xf32>
    %147 = vector.extract_strided_slice %23 {offsets = [0, 0], sizes = [2, 32], strides = [1, 1]} : vector<2x96xf32> to vector<2x32xf32>
    %148 = vector.extract_strided_slice %146 {offsets = [0, 0], sizes = [2, 32], strides = [1, 1]} : vector<2x96xf32> to vector<2x32xf32>
    %149 = arith.addf %147, %148 : vector<2x32xf32>
    %150 = arith.negf %149 : vector<2x32xf32>
    %151 = math.exp %150 : vector<2x32xf32>
    %cst_55 = arith.constant 1.000000e+00 : f32
    %152 = vector.broadcast %cst_55 : f32 to vector<2x32xf32>
    %153 = arith.addf %152, %151 : vector<2x32xf32>
    %154 = arith.divf %152, %153 : vector<2x32xf32>
    %155 = vector.extract_strided_slice %23 {offsets = [0, 32], sizes = [2, 32], strides = [1, 1]} : vector<2x96xf32> to vector<2x32xf32>
    %156 = vector.extract_strided_slice %146 {offsets = [0, 32], sizes = [2, 32], strides = [1, 1]} : vector<2x96xf32> to vector<2x32xf32>
    %157 = arith.addf %155, %156 : vector<2x32xf32>
    %158 = arith.negf %157 : vector<2x32xf32>
    %159 = math.exp %158 : vector<2x32xf32>
    %cst_56 = arith.constant 1.000000e+00 : f32
    %160 = vector.broadcast %cst_56 : f32 to vector<2x32xf32>
    %161 = arith.addf %160, %159 : vector<2x32xf32>
    %162 = arith.divf %160, %161 : vector<2x32xf32>
    %163 = vector.extract_strided_slice %23 {offsets = [0, 64], sizes = [2, 32], strides = [1, 1]} : vector<2x96xf32> to vector<2x32xf32>
    %164 = vector.extract_strided_slice %146 {offsets = [0, 64], sizes = [2, 32], strides = [1, 1]} : vector<2x96xf32> to vector<2x32xf32>
    %165 = arith.mulf %154, %164 : vector<2x32xf32>
    %166 = arith.addf %163, %165 : vector<2x32xf32>
    %167 = math.tanh %166 : vector<2x32xf32>
    %cst_57 = arith.constant 1.000000e+00 : f32
    %168 = vector.broadcast %cst_57 : f32 to vector<2x32xf32>
    %169 = arith.subf %168, %162 : vector<2x32xf32>
    %170 = arith.mulf %169, %167 : vector<2x32xf32>
    %171 = arith.mulf %162, %139 : vector<2x32xf32>
    %172 = arith.addf %170, %171 : vector<2x32xf32>
    %173 = vector.extract_strided_slice %172 {offsets = [0, 0], sizes = [1, 32], strides = [1, 1]} : vector<2x32xf32> to vector<1x32xf32>
    %c3_58 = arith.constant 3 : index
    %c0_59 = arith.constant 0 : index
    %174 = vector.load %arg14[%c3_58, %c0_59] : memref<16x32xf32, #tpu.memory_space<vmem>>, vector<1x32xf32>
    tpu.vector_store %arg14[%c3_58, %c0_59], %173 {strides = array<i32>} : memref<16x32xf32, #tpu.memory_space<vmem>>, vector<1x32xf32>,
    %175 = vector.extract_strided_slice %172 {offsets = [1, 0], sizes = [1, 32], strides = [1, 1]} : vector<2x32xf32> to vector<1x32xf32>
    %c11 = arith.constant 11 : index
    %c0_60 = arith.constant 0 : index
    %176 = vector.load %arg14[%c11, %c0_60] : memref<16x32xf32, #tpu.memory_space<vmem>>, vector<1x32xf32>
    tpu.vector_store %arg14[%c11, %c0_60], %175 {strides = array<i32>} : memref<16x32xf32, #tpu.memory_space<vmem>>, vector<1x32xf32>,
    %cst_61 = arith.constant dense<0.000000e+00> : vector<2x96xf32>
    %177 = tpu.matmul %172, %1, %cst_61 {dimension_numbers = #tpu.dot_dimension_numbers<[1], [0], [0], [1], [0, 0, 1, 1], [], []>} : vector<2x32xf32>, vector<32x96xf32>, vector<2x96xf32> -> vector<2x96xf32>
    %178 = vector.broadcast %3 : vector<1x96xf32> to vector<2x96xf32>
    %179 = arith.addf %177, %178 : vector<2x96xf32>
    %180 = vector.extract_strided_slice %28 {offsets = [0, 0], sizes = [2, 32], strides = [1, 1]} : vector<2x96xf32> to vector<2x32xf32>
    %181 = vector.extract_strided_slice %179 {offsets = [0, 0], sizes = [2, 32], strides = [1, 1]} : vector<2x96xf32> to vector<2x32xf32>
    %182 = arith.addf %180, %181 : vector<2x32xf32>
    %183 = arith.negf %182 : vector<2x32xf32>
    %184 = math.exp %183 : vector<2x32xf32>
    %cst_62 = arith.constant 1.000000e+00 : f32
    %185 = vector.broadcast %cst_62 : f32 to vector<2x32xf32>
    %186 = arith.addf %185, %184 : vector<2x32xf32>
    %187 = arith.divf %185, %186 : vector<2x32xf32>
    %188 = vector.extract_strided_slice %28 {offsets = [0, 32], sizes = [2, 32], strides = [1, 1]} : vector<2x96xf32> to vector<2x32xf32>
    %189 = vector.extract_strided_slice %179 {offsets = [0, 32], sizes = [2, 32], strides = [1, 1]} : vector<2x96xf32> to vector<2x32xf32>
    %190 = arith.addf %188, %189 : vector<2x32xf32>
    %191 = arith.negf %190 : vector<2x32xf32>
    %192 = math.exp %191 : vector<2x32xf32>
    %cst_63 = arith.constant 1.000000e+00 : f32
    %193 = vector.broadcast %cst_63 : f32 to vector<2x32xf32>
    %194 = arith.addf %193, %192 : vector<2x32xf32>
    %195 = arith.divf %193, %194 : vector<2x32xf32>
    %196 = vector.extract_strided_slice %28 {offsets = [0, 64], sizes = [2, 32], strides = [1, 1]} : vector<2x96xf32> to vector<2x32xf32>
    %197 = vector.extract_strided_slice %179 {offsets = [0, 64], sizes = [2, 32], strides = [1, 1]} : vector<2x96xf32> to vector<2x32xf32>
    %198 = arith.mulf %187, %197 : vector<2x32xf32>
    %199 = arith.addf %196, %198 : vector<2x32xf32>
    %200 = math.tanh %199 : vector<2x32xf32>
    %cst_64 = arith.constant 1.000000e+00 : f32
    %201 = vector.broadcast %cst_64 : f32 to vector<2x32xf32>
    %202 = arith.subf %201, %195 : vector<2x32xf32>
    %203 = arith.mulf %202, %200 : vector<2x32xf32>
    %204 = arith.mulf %195, %172 : vector<2x32xf32>
    %205 = arith.addf %203, %204 : vector<2x32xf32>
    %206 = vector.extract_strided_slice %205 {offsets = [0, 0], sizes = [1, 32], strides = [1, 1]} : vector<2x32xf32> to vector<1x32xf32>
    %c4_65 = arith.constant 4 : index
    %c0_66 = arith.constant 0 : index
    %207 = vector.load %arg14[%c4_65, %c0_66] : memref<16x32xf32, #tpu.memory_space<vmem>>, vector<1x32xf32>
    tpu.vector_store %arg14[%c4_65, %c0_66], %206 {strides = array<i32>} : memref<16x32xf32, #tpu.memory_space<vmem>>, vector<1x32xf32>,
    %208 = vector.extract_strided_slice %205 {offsets = [1, 0], sizes = [1, 32], strides = [1, 1]} : vector<2x32xf32> to vector<1x32xf32>
    %c12 = arith.constant 12 : index
    %c0_67 = arith.constant 0 : index
    %209 = vector.load %arg14[%c12, %c0_67] : memref<16x32xf32, #tpu.memory_space<vmem>>, vector<1x32xf32>
    tpu.vector_store %arg14[%c12, %c0_67], %208 {strides = array<i32>} : memref<16x32xf32, #tpu.memory_space<vmem>>, vector<1x32xf32>,
    %cst_68 = arith.constant dense<0.000000e+00> : vector<2x96xf32>
    %210 = tpu.matmul %205, %1, %cst_68 {dimension_numbers = #tpu.dot_dimension_numbers<[1], [0], [0], [1], [0, 0, 1, 1], [], []>} : vector<2x32xf32>, vector<32x96xf32>, vector<2x96xf32> -> vector<2x96xf32>
    %211 = vector.broadcast %3 : vector<1x96xf32> to vector<2x96xf32>
    %212 = arith.addf %210, %211 : vector<2x96xf32>
    %213 = vector.extract_strided_slice %33 {offsets = [0, 0], sizes = [2, 32], strides = [1, 1]} : vector<2x96xf32> to vector<2x32xf32>
    %214 = vector.extract_strided_slice %212 {offsets = [0, 0], sizes = [2, 32], strides = [1, 1]} : vector<2x96xf32> to vector<2x32xf32>
    %215 = arith.addf %213, %214 : vector<2x32xf32>
    %216 = arith.negf %215 : vector<2x32xf32>
    %217 = math.exp %216 : vector<2x32xf32>
    %cst_69 = arith.constant 1.000000e+00 : f32
    %218 = vector.broadcast %cst_69 : f32 to vector<2x32xf32>
    %219 = arith.addf %218, %217 : vector<2x32xf32>
    %220 = arith.divf %218, %219 : vector<2x32xf32>
    %221 = vector.extract_strided_slice %33 {offsets = [0, 32], sizes = [2, 32], strides = [1, 1]} : vector<2x96xf32> to vector<2x32xf32>
    %222 = vector.extract_strided_slice %212 {offsets = [0, 32], sizes = [2, 32], strides = [1, 1]} : vector<2x96xf32> to vector<2x32xf32>
    %223 = arith.addf %221, %222 : vector<2x32xf32>
    %224 = arith.negf %223 : vector<2x32xf32>
    %225 = math.exp %224 : vector<2x32xf32>
    %cst_70 = arith.constant 1.000000e+00 : f32
    %226 = vector.broadcast %cst_70 : f32 to vector<2x32xf32>
    %227 = arith.addf %226, %225 : vector<2x32xf32>
    %228 = arith.divf %226, %227 : vector<2x32xf32>
    %229 = vector.extract_strided_slice %33 {offsets = [0, 64], sizes = [2, 32], strides = [1, 1]} : vector<2x96xf32> to vector<2x32xf32>
    %230 = vector.extract_strided_slice %212 {offsets = [0, 64], sizes = [2, 32], strides = [1, 1]} : vector<2x96xf32> to vector<2x32xf32>
    %231 = arith.mulf %220, %230 : vector<2x32xf32>
    %232 = arith.addf %229, %231 : vector<2x32xf32>
    %233 = math.tanh %232 : vector<2x32xf32>
    %cst_71 = arith.constant 1.000000e+00 : f32
    %234 = vector.broadcast %cst_71 : f32 to vector<2x32xf32>
    %235 = arith.subf %234, %228 : vector<2x32xf32>
    %236 = arith.mulf %235, %233 : vector<2x32xf32>
    %237 = arith.mulf %228, %205 : vector<2x32xf32>
    %238 = arith.addf %236, %237 : vector<2x32xf32>
    %239 = vector.extract_strided_slice %238 {offsets = [0, 0], sizes = [1, 32], strides = [1, 1]} : vector<2x32xf32> to vector<1x32xf32>
    %c5_72 = arith.constant 5 : index
    %c0_73 = arith.constant 0 : index
    %240 = vector.load %arg14[%c5_72, %c0_73] : memref<16x32xf32, #tpu.memory_space<vmem>>, vector<1x32xf32>
    tpu.vector_store %arg14[%c5_72, %c0_73], %239 {strides = array<i32>} : memref<16x32xf32, #tpu.memory_space<vmem>>, vector<1x32xf32>,
    %241 = vector.extract_strided_slice %238 {offsets = [1, 0], sizes = [1, 32], strides = [1, 1]} : vector<2x32xf32> to vector<1x32xf32>
    %c13 = arith.constant 13 : index
    %c0_74 = arith.constant 0 : index
    %242 = vector.load %arg14[%c13, %c0_74] : memref<16x32xf32, #tpu.memory_space<vmem>>, vector<1x32xf32>
    tpu.vector_store %arg14[%c13, %c0_74], %241 {strides = array<i32>} : memref<16x32xf32, #tpu.memory_space<vmem>>, vector<1x32xf32>,
    %cst_75 = arith.constant dense<0.000000e+00> : vector<2x96xf32>
    %243 = tpu.matmul %238, %1, %cst_75 {dimension_numbers = #tpu.dot_dimension_numbers<[1], [0], [0], [1], [0, 0, 1, 1], [], []>} : vector<2x32xf32>, vector<32x96xf32>, vector<2x96xf32> -> vector<2x96xf32>
    %244 = vector.broadcast %3 : vector<1x96xf32> to vector<2x96xf32>
    %245 = arith.addf %243, %244 : vector<2x96xf32>
    %246 = vector.extract_strided_slice %38 {offsets = [0, 0], sizes = [2, 32], strides = [1, 1]} : vector<2x96xf32> to vector<2x32xf32>
    %247 = vector.extract_strided_slice %245 {offsets = [0, 0], sizes = [2, 32], strides = [1, 1]} : vector<2x96xf32> to vector<2x32xf32>
    %248 = arith.addf %246, %247 : vector<2x32xf32>
    %249 = arith.negf %248 : vector<2x32xf32>
    %250 = math.exp %249 : vector<2x32xf32>
    %cst_76 = arith.constant 1.000000e+00 : f32
    %251 = vector.broadcast %cst_76 : f32 to vector<2x32xf32>
    %252 = arith.addf %251, %250 : vector<2x32xf32>
    %253 = arith.divf %251, %252 : vector<2x32xf32>
    %254 = vector.extract_strided_slice %38 {offsets = [0, 32], sizes = [2, 32], strides = [1, 1]} : vector<2x96xf32> to vector<2x32xf32>
    %255 = vector.extract_strided_slice %245 {offsets = [0, 32], sizes = [2, 32], strides = [1, 1]} : vector<2x96xf32> to vector<2x32xf32>
    %256 = arith.addf %254, %255 : vector<2x32xf32>
    %257 = arith.negf %256 : vector<2x32xf32>
    %258 = math.exp %257 : vector<2x32xf32>
    %cst_77 = arith.constant 1.000000e+00 : f32
    %259 = vector.broadcast %cst_77 : f32 to vector<2x32xf32>
    %260 = arith.addf %259, %258 : vector<2x32xf32>
    %261 = arith.divf %259, %260 : vector<2x32xf32>
    %262 = vector.extract_strided_slice %38 {offsets = [0, 64], sizes = [2, 32], strides = [1, 1]} : vector<2x96xf32> to vector<2x32xf32>
    %263 = vector.extract_strided_slice %245 {offsets = [0, 64], sizes = [2, 32], strides = [1, 1]} : vector<2x96xf32> to vector<2x32xf32>
    %264 = arith.mulf %253, %263 : vector<2x32xf32>
    %265 = arith.addf %262, %264 : vector<2x32xf32>
    %266 = math.tanh %265 : vector<2x32xf32>
    %cst_78 = arith.constant 1.000000e+00 : f32
    %267 = vector.broadcast %cst_78 : f32 to vector<2x32xf32>
    %268 = arith.subf %267, %261 : vector<2x32xf32>
    %269 = arith.mulf %268, %266 : vector<2x32xf32>
    %270 = arith.mulf %261, %238 : vector<2x32xf32>
    %271 = arith.addf %269, %270 : vector<2x32xf32>
    %272 = vector.extract_strided_slice %271 {offsets = [0, 0], sizes = [1, 32], strides = [1, 1]} : vector<2x32xf32> to vector<1x32xf32>
    %c6_79 = arith.constant 6 : index
    %c0_80 = arith.constant 0 : index
    %273 = vector.load %arg14[%c6_79, %c0_80] : memref<16x32xf32, #tpu.memory_space<vmem>>, vector<1x32xf32>
    tpu.vector_store %arg14[%c6_79, %c0_80], %272 {strides = array<i32>} : memref<16x32xf32, #tpu.memory_space<vmem>>, vector<1x32xf32>,
    %274 = vector.extract_strided_slice %271 {offsets = [1, 0], sizes = [1, 32], strides = [1, 1]} : vector<2x32xf32> to vector<1x32xf32>
    %c14 = arith.constant 14 : index
    %c0_81 = arith.constant 0 : index
    %275 = vector.load %arg14[%c14, %c0_81] : memref<16x32xf32, #tpu.memory_space<vmem>>, vector<1x32xf32>
    tpu.vector_store %arg14[%c14, %c0_81], %274 {strides = array<i32>} : memref<16x32xf32, #tpu.memory_space<vmem>>, vector<1x32xf32>,
    %cst_82 = arith.constant dense<0.000000e+00> : vector<2x96xf32>
    %276 = tpu.matmul %271, %1, %cst_82 {dimension_numbers = #tpu.dot_dimension_numbers<[1], [0], [0], [1], [0, 0, 1, 1], [], []>} : vector<2x32xf32>, vector<32x96xf32>, vector<2x96xf32> -> vector<2x96xf32>
    %277 = vector.broadcast %3 : vector<1x96xf32> to vector<2x96xf32>
    %278 = arith.addf %276, %277 : vector<2x96xf32>
    %279 = vector.extract_strided_slice %43 {offsets = [0, 0], sizes = [2, 32], strides = [1, 1]} : vector<2x96xf32> to vector<2x32xf32>
    %280 = vector.extract_strided_slice %278 {offsets = [0, 0], sizes = [2, 32], strides = [1, 1]} : vector<2x96xf32> to vector<2x32xf32>
    %281 = arith.addf %279, %280 : vector<2x32xf32>
    %282 = arith.negf %281 : vector<2x32xf32>
    %283 = math.exp %282 : vector<2x32xf32>
    %cst_83 = arith.constant 1.000000e+00 : f32
    %284 = vector.broadcast %cst_83 : f32 to vector<2x32xf32>
    %285 = arith.addf %284, %283 : vector<2x32xf32>
    %286 = arith.divf %284, %285 : vector<2x32xf32>
    %287 = vector.extract_strided_slice %43 {offsets = [0, 32], sizes = [2, 32], strides = [1, 1]} : vector<2x96xf32> to vector<2x32xf32>
    %288 = vector.extract_strided_slice %278 {offsets = [0, 32], sizes = [2, 32], strides = [1, 1]} : vector<2x96xf32> to vector<2x32xf32>
    %289 = arith.addf %287, %288 : vector<2x32xf32>
    %290 = arith.negf %289 : vector<2x32xf32>
    %291 = math.exp %290 : vector<2x32xf32>
    %cst_84 = arith.constant 1.000000e+00 : f32
    %292 = vector.broadcast %cst_84 : f32 to vector<2x32xf32>
    %293 = arith.addf %292, %291 : vector<2x32xf32>
    %294 = arith.divf %292, %293 : vector<2x32xf32>
    %295 = vector.extract_strided_slice %43 {offsets = [0, 64], sizes = [2, 32], strides = [1, 1]} : vector<2x96xf32> to vector<2x32xf32>
    %296 = vector.extract_strided_slice %278 {offsets = [0, 64], sizes = [2, 32], strides = [1, 1]} : vector<2x96xf32> to vector<2x32xf32>
    %297 = arith.mulf %286, %296 : vector<2x32xf32>
    %298 = arith.addf %295, %297 : vector<2x32xf32>
    %299 = math.tanh %298 : vector<2x32xf32>
    %cst_85 = arith.constant 1.000000e+00 : f32
    %300 = vector.broadcast %cst_85 : f32 to vector<2x32xf32>
    %301 = arith.subf %300, %294 : vector<2x32xf32>
    %302 = arith.mulf %301, %299 : vector<2x32xf32>
    %303 = arith.mulf %294, %271 : vector<2x32xf32>
    %304 = arith.addf %302, %303 : vector<2x32xf32>
    %305 = vector.extract_strided_slice %304 {offsets = [0, 0], sizes = [1, 32], strides = [1, 1]} : vector<2x32xf32> to vector<1x32xf32>
    %c7_86 = arith.constant 7 : index
    %c0_87 = arith.constant 0 : index
    %306 = vector.load %arg14[%c7_86, %c0_87] : memref<16x32xf32, #tpu.memory_space<vmem>>, vector<1x32xf32>
    tpu.vector_store %arg14[%c7_86, %c0_87], %305 {strides = array<i32>} : memref<16x32xf32, #tpu.memory_space<vmem>>, vector<1x32xf32>,
    %307 = vector.extract_strided_slice %304 {offsets = [1, 0], sizes = [1, 32], strides = [1, 1]} : vector<2x32xf32> to vector<1x32xf32>
    %c15 = arith.constant 15 : index
    %c0_88 = arith.constant 0 : index
    %308 = vector.load %arg14[%c15, %c0_88] : memref<16x32xf32, #tpu.memory_space<vmem>>, vector<1x32xf32>
    tpu.vector_store %arg14[%c15, %c0_88], %307 {strides = array<i32>} : memref<16x32xf32, #tpu.memory_space<vmem>>, vector<1x32xf32>,
    %c0_89 = arith.constant 0 : index
    %c0_90 = arith.constant 0 : index
    %309 = vector.load %arg13[%c0_89, %c0_90] : memref<2x32xf32, #tpu.memory_space<vmem>>, vector<2x32xf32>
    tpu.vector_store %arg13[%c0_89, %c0_90], %304 {strides = array<i32>} : memref<2x32xf32, #tpu.memory_space<vmem>>, vector<2x32xf32>,
    %c0_91 = arith.constant 0 : index
    %c0_92 = arith.constant 0 : index
    %310 = vector.load %arg8[%c0_91, %c0_92] : memref<64x32xf32, #tpu.memory_space<vmem>>, vector<32x32xf32>
    %c32 = arith.constant 32 : index
    %c0_93 = arith.constant 0 : index
    %311 = vector.load %arg8[%c32, %c0_93] : memref<64x32xf32, #tpu.memory_space<vmem>>, vector<32x32xf32>
    %c0_94 = arith.constant 0 : index
    %c0_95 = arith.constant 0 : index
    %312 = vector.load %arg9[%c0_94, %c0_95] : memref<1x32xf32, #tpu.memory_space<vmem>>, vector<1x32xf32>
    %c0_96 = arith.constant 0 : index
    %c0_97 = arith.constant 0 : index
    %313 = vector.load %arg10[%c0_96, %c0_97] : memref<32x128xf32, #tpu.memory_space<vmem>>, vector<32x128xf32>
    %c0_98 = arith.constant 0 : index
    %c0_99 = arith.constant 0 : index
    %314 = vector.load %arg11[%c0_98, %c0_99] : memref<1x128xf32, #tpu.memory_space<vmem>>, vector<1x128xf32>
    %c0_100 = arith.constant 0 : index
    %c0_101 = arith.constant 0 : index
    %c0_102 = arith.constant 0 : index
    %315 = vector.load %arg3[%c0_100, %c0_101, %c0_102] : memref<2x8x32xf32, #tpu.memory_space<vmem>>, vector<1x8x32xf32>
    %316 = vector.shape_cast %315 : vector<1x8x32xf32> to vector<8x32xf32>
    %c0_103 = arith.constant 0 : index
    %c0_104 = arith.constant 0 : index
    %317 = vector.load %arg14[%c0_103, %c0_104] : memref<16x32xf32, #tpu.memory_space<vmem>>, vector<8x32xf32>
    %cst_105 = arith.constant dense<0.000000e+00> : vector<8x8xf32>
    %318 = tpu.matmul %317, %316, %cst_105 {dimension_numbers = #tpu.dot_dimension_numbers<[1], [1], [0], [0], [0, 0, 1, 0], [], []>} : vector<8x32xf32>, vector<8x32xf32>, vector<8x8xf32> -> vector<8x8xf32>
    %cst_106 = arith.constant dense<0xFF800000> : vector<8xf32>
    %319 = vector.multi_reduction <maximumf>, %318, %cst_106 [1] : vector<8x8xf32> to vector<8xf32>
    %320 = vector.shape_cast %319 : vector<8xf32> to vector<8x1xf32>
    %321 = vector.broadcast %320 : vector<8x1xf32> to vector<8x8xf32>
    %322 = arith.subf %318, %321 : vector<8x8xf32>
    %323 = math.exp %322 : vector<8x8xf32>
    %cst_107 = arith.constant dense<0.000000e+00> : vector<8xf32>
    %324 = vector.multi_reduction <add>, %323, %cst_107 [1] : vector<8x8xf32> to vector<8xf32>
    %325 = vector.shape_cast %324 : vector<8xf32> to vector<8x1xf32>
    %326 = tpu.reciprocal %325 {approx = true} : vector<8x1xf32> -> vector<8x1xf32>
    %327 = vector.broadcast %326 : vector<8x1xf32> to vector<8x8xf32>
    %328 = arith.mulf %323, %327 : vector<8x8xf32>
    %cst_108 = arith.constant dense<0.000000e+00> : vector<8x32xf32>
    %329 = tpu.matmul %328, %316, %cst_108 {dimension_numbers = #tpu.dot_dimension_numbers<[1], [0], [0], [1], [0, 0, 1, 1], [], []>} : vector<8x8xf32>, vector<8x32xf32>, vector<8x32xf32> -> vector<8x32xf32>
    %cst_109 = arith.constant dense<0.000000e+00> : vector<8x32xf32>
    %330 = tpu.matmul %329, %310, %cst_109 {dimension_numbers = #tpu.dot_dimension_numbers<[1], [0], [0], [1], [0, 0, 1, 1], [], []>} : vector<8x32xf32>, vector<32x32xf32>, vector<8x32xf32> -> vector<8x32xf32>
    %cst_110 = arith.constant dense<0.000000e+00> : vector<8x32xf32>
    %331 = tpu.matmul %317, %311, %cst_110 {dimension_numbers = #tpu.dot_dimension_numbers<[1], [0], [0], [1], [0, 0, 1, 1], [], []>} : vector<8x32xf32>, vector<32x32xf32>, vector<8x32xf32> -> vector<8x32xf32>
    %332 = arith.addf %330, %331 : vector<8x32xf32>
    %333 = vector.broadcast %312 : vector<1x32xf32> to vector<8x32xf32>
    %334 = arith.addf %332, %333 : vector<8x32xf32>
    %335 = math.tanh %334 : vector<8x32xf32>
    %cst_111 = arith.constant dense<0.000000e+00> : vector<8x128xf32>
    %336 = tpu.matmul %335, %313, %cst_111 {dimension_numbers = #tpu.dot_dimension_numbers<[1], [0], [0], [1], [0, 0, 1, 1], [], []>} : vector<8x32xf32>, vector<32x128xf32>, vector<8x128xf32> -> vector<8x128xf32>
    %337 = vector.broadcast %314 : vector<1x128xf32> to vector<8x128xf32>
    %338 = arith.addf %336, %337 : vector<8x128xf32>
    %c0_112 = arith.constant 0 : index
    %c0_113 = arith.constant 0 : index
    %339 = vector.load %arg12[%c0_112, %c0_113] : memref<16x128xf32, #tpu.memory_space<vmem>>, vector<8x128xf32>
    tpu.vector_store %arg12[%c0_112, %c0_113], %338 {strides = array<i32>} : memref<16x128xf32, #tpu.memory_space<vmem>>, vector<8x128xf32>,
    %c1_114 = arith.constant 1 : index
    %c0_115 = arith.constant 0 : index
    %c0_116 = arith.constant 0 : index
    %340 = vector.load %arg3[%c1_114, %c0_115, %c0_116] : memref<2x8x32xf32, #tpu.memory_space<vmem>>, vector<1x8x32xf32>
    %341 = vector.shape_cast %340 : vector<1x8x32xf32> to vector<8x32xf32>
    %c8_117 = arith.constant 8 : index
    %c0_118 = arith.constant 0 : index
    %342 = vector.load %arg14[%c8_117, %c0_118] : memref<16x32xf32, #tpu.memory_space<vmem>>, vector<8x32xf32>
    %cst_119 = arith.constant dense<0.000000e+00> : vector<8x8xf32>
    %343 = tpu.matmul %342, %341, %cst_119 {dimension_numbers = #tpu.dot_dimension_numbers<[1], [1], [0], [0], [0, 0, 1, 0], [], []>} : vector<8x32xf32>, vector<8x32xf32>, vector<8x8xf32> -> vector<8x8xf32>
    %cst_120 = arith.constant dense<0xFF800000> : vector<8xf32>
    %344 = vector.multi_reduction <maximumf>, %343, %cst_120 [1] : vector<8x8xf32> to vector<8xf32>
    %345 = vector.shape_cast %344 : vector<8xf32> to vector<8x1xf32>
    %346 = vector.broadcast %345 : vector<8x1xf32> to vector<8x8xf32>
    %347 = arith.subf %343, %346 : vector<8x8xf32>
    %348 = math.exp %347 : vector<8x8xf32>
    %cst_121 = arith.constant dense<0.000000e+00> : vector<8xf32>
    %349 = vector.multi_reduction <add>, %348, %cst_121 [1] : vector<8x8xf32> to vector<8xf32>
    %350 = vector.shape_cast %349 : vector<8xf32> to vector<8x1xf32>
    %351 = tpu.reciprocal %350 {approx = true} : vector<8x1xf32> -> vector<8x1xf32>
    %352 = vector.broadcast %351 : vector<8x1xf32> to vector<8x8xf32>
    %353 = arith.mulf %348, %352 : vector<8x8xf32>
    %cst_122 = arith.constant dense<0.000000e+00> : vector<8x32xf32>
    %354 = tpu.matmul %353, %341, %cst_122 {dimension_numbers = #tpu.dot_dimension_numbers<[1], [0], [0], [1], [0, 0, 1, 1], [], []>} : vector<8x8xf32>, vector<8x32xf32>, vector<8x32xf32> -> vector<8x32xf32>
    %cst_123 = arith.constant dense<0.000000e+00> : vector<8x32xf32>
    %355 = tpu.matmul %354, %310, %cst_123 {dimension_numbers = #tpu.dot_dimension_numbers<[1], [0], [0], [1], [0, 0, 1, 1], [], []>} : vector<8x32xf32>, vector<32x32xf32>, vector<8x32xf32> -> vector<8x32xf32>
    %cst_124 = arith.constant dense<0.000000e+00> : vector<8x32xf32>
    %356 = tpu.matmul %342, %311, %cst_124 {dimension_numbers = #tpu.dot_dimension_numbers<[1], [0], [0], [1], [0, 0, 1, 1], [], []>} : vector<8x32xf32>, vector<32x32xf32>, vector<8x32xf32> -> vector<8x32xf32>
    %357 = arith.addf %355, %356 : vector<8x32xf32>
    %358 = vector.broadcast %312 : vector<1x32xf32> to vector<8x32xf32>
    %359 = arith.addf %357, %358 : vector<8x32xf32>
    %360 = math.tanh %359 : vector<8x32xf32>
    %cst_125 = arith.constant dense<0.000000e+00> : vector<8x128xf32>
    %361 = tpu.matmul %360, %313, %cst_125 {dimension_numbers = #tpu.dot_dimension_numbers<[1], [0], [0], [1], [0, 0, 1, 1], [], []>} : vector<8x32xf32>, vector<32x128xf32>, vector<8x128xf32> -> vector<8x128xf32>
    %362 = vector.broadcast %314 : vector<1x128xf32> to vector<8x128xf32>
    %363 = arith.addf %361, %362 : vector<8x128xf32>
    %c8_126 = arith.constant 8 : index
    %c0_127 = arith.constant 0 : index
    %364 = vector.load %arg12[%c8_126, %c0_127] : memref<16x128xf32, #tpu.memory_space<vmem>>, vector<8x128xf32>
    tpu.vector_store %arg12[%c8_126, %c0_127], %363 {strides = array<i32>} : memref<16x128xf32, #tpu.memory_space<vmem>>, vector<8x128xf32>,
    return
  }
  func.func @transform_0(%arg0: i32) -> (i32, i32, i32) {
    %c0_i32 = arith.constant 0 : i32
    %c0_i32_0 = arith.constant 0 : i32
    %c0_i32_1 = arith.constant 0 : i32
    return %c0_i32, %arg0, %c0_i32_0 : i32, i32, i32
  }
  func.func @transform_1(%arg0: i32) -> (i32, i32) {
    %c0_i32 = arith.constant 0 : i32
    %c0_i32_0 = arith.constant 0 : i32
    return %arg0, %c0_i32 : i32, i32
  }
  func.func @transform_2(%arg0: i32) -> (i32, i32, i32) {
    %c0_i32 = arith.constant 0 : i32
    %c0_i32_0 = arith.constant 0 : i32
    %c0_i32_1 = arith.constant 0 : i32
    return %arg0, %c0_i32, %c0_i32_0 : i32, i32, i32
  }
  func.func @transform_3(%arg0: i32) -> (i32, i32) {
    %c0_i32 = arith.constant 0 : i32
    %c0_i32_0 = arith.constant 0 : i32
    %c0_i32_1 = arith.constant 0 : i32
    return %c0_i32, %c0_i32_0 : i32, i32
  }
  func.func @transform_4(%arg0: i32) -> (i32, i32) {
    %c0_i32 = arith.constant 0 : i32
    %c0_i32_0 = arith.constant 0 : i32
    %c0_i32_1 = arith.constant 0 : i32
    return %c0_i32, %c0_i32_0 : i32, i32
  }
  func.func @transform_5(%arg0: i32) -> (i32, i32) {
    %c0_i32 = arith.constant 0 : i32
    %c0_i32_0 = arith.constant 0 : i32
    %c0_i32_1 = arith.constant 0 : i32
    return %c0_i32, %c0_i32_0 : i32, i32
  }
  func.func @transform_6(%arg0: i32) -> (i32, i32) {
    %c0_i32 = arith.constant 0 : i32
    %c0_i32_0 = arith.constant 0 : i32
    %c0_i32_1 = arith.constant 0 : i32
    return %c0_i32, %c0_i32_0 : i32, i32
  }
  func.func @transform_7(%arg0: i32) -> (i32, i32) {
    %c0_i32 = arith.constant 0 : i32
    %c0_i32_0 = arith.constant 0 : i32
    %c0_i32_1 = arith.constant 0 : i32
    return %c0_i32, %c0_i32_0 : i32, i32
  }
  func.func @transform_8(%arg0: i32) -> (i32, i32) {
    %c0_i32 = arith.constant 0 : i32
    %c0_i32_0 = arith.constant 0 : i32
    %c0_i32_1 = arith.constant 0 : i32
    return %c0_i32, %c0_i32_0 : i32, i32
  }
  func.func @transform_9(%arg0: i32) -> (i32, i32) {
    %c0_i32 = arith.constant 0 : i32
    %c0_i32_0 = arith.constant 0 : i32
    %c0_i32_1 = arith.constant 0 : i32
    return %c0_i32, %c0_i32_0 : i32, i32
  }
  func.func @transform_10(%arg0: i32) -> (i32, i32) {
    %c0_i32 = arith.constant 0 : i32
    %c0_i32_0 = arith.constant 0 : i32
    %c0_i32_1 = arith.constant 0 : i32
    return %c0_i32, %c0_i32_0 : i32, i32
  }
  func.func @transform_11(%arg0: i32) -> (i32, i32) {
    %c0_i32 = arith.constant 0 : i32
    %c0_i32_0 = arith.constant 0 : i32
    return %arg0, %c0_i32 : i32, i32
  }
  func.func @transform_12(%arg0: i32) -> (i32, i32) {
    %c0_i32 = arith.constant 0 : i32
    %c0_i32_0 = arith.constant 0 : i32
    return %arg0, %c0_i32 : i32, i32
  }
}

</mosaic_0001>

<bundles_post_ra>
// kernel: tpu_custom_call.1
= control target key start
LH: loop header
LB: loop body
LE: loop exit
PB: predicated region body
PF: predicated region fallthrough
CT: control target
= control target key end

     0   :  { %18 = vsyncpa [#allocation4], 0  ;;  %vm56_vm0 = vcmask 64512   ;;  %v2880_v2 = vmov 0.0   ;;  %vm2881_vm1 = vmmov 0   ;;  %s3331_s0 = inlined_call_operand.vmem [shape: f32[8,2,8], index: 0, kind: input, shape index: {}]   ;;  %s3332_s1 = inlined_call_operand.vmem [shape: f32[2,32], index: 1, kind: input, shape index: {}]   ;;  %s3333_s2 = inlined_call_operand.vmem [shape: f32[2,8,32], index: 2, kind: input, shape index: {}]   ;;  %s3334_s3 = inlined_call_operand.vmem [shape: f32[8,96], index: 3, kind: input, shape index: {}]   ;;  %s3335_s4 = inlined_call_operand.vmem [shape: f32[32,96], index: 4, kind: input, shape index: {}]   ;;  %s3336_s5 = inlined_call_operand.vmem [shape: f32[1,96], index: 5, kind: input, shape index: {}]   ;;  %s3337_s6 = inlined_call_operand.vmem [shape: f32[1,96], index: 6, kind: input, shape index: {}]   ;;  %s3338_s7 = inlined_call_operand.vmem [shape: f32[64,32], index: 7, kind: input, shape index: {}]   ;;  %s3339_s8 = inlined_call_operand.vmem [shape: f32[1,32], index: 8, kind: input, shape index: {}]   ;;  %s3340_s9 = inlined_call_operand.vmem [shape: f32[32,128], index: 9, kind: input, shape index: {}]   ;;  %s3341_s10 = inlined_call_operand.vmem [shape: f32[1,128], index: 10, kind: input, shape index: {}]   ;;  %s3342_s11 = inlined_call_operand.hbm [shape: f32[16,128], index: 11, kind: output, shape index: {0}]   ;;  %s3343_s12 = inlined_call_operand.hbm [shape: f32[2,32], index: 12, kind: output, shape index: {1}]  }
   0x1   :  { %v2958_v0 = vld [vmem:[%s3334_s3] sm:$0xff]  ;;  %2474 = vmatprep.subr.mxu0 %v2880_v2  ;;  %2476 = vmatprep.mubr.msk.f32.mxu0 %vm2881_vm1, %v2880_v2  ;;  %v2330_v3 = vld [vmem:[%s3331_s0 + $0x8] sm:$0x3] }
   0x2   :  { %v2326_v1 = vld [vmem:[%s3331_s0 + $0x4] sm:$0x3]  ;;  %2475 = vmatpush3.msra.mxu0 %v2958_v0  ;;  %2464 = vmatprep.subr.mxu1 %v2880_v2  ;;  %v49_v4 = vld [vmem:[%s3331_s0] sm:$0x3] }
   0x3   :  { %2477 = vmatmul.mubr.msk.f32.vlgmr.msra.gmra.mrb[0].mxu0 %vm56_vm0, %v2326_v1  ;;  %2484 = vmatprep.subr.mxu0 %v2880_v2 }
   0x4   :  { %2485 = vmatpush3.msra.mxu0 %v2958_v0  ;;  %2486 = vmatprep.mubr.msk.f32.mxu0 %vm2881_vm1, %v2880_v2 }
   0x5   :  { %19 = vsyncpa [#allocation6], 0  ;;  %2494 = vmatprep.subr.mxu0 %v2880_v2  ;;  %v43_v5 = vld [vmem:[%s3335_s4] sm:$0xff]  ;;  %v44_v6 = vld [vmem:[%s3335_s4 + $0x8] sm:$0xff]  ;;  %2465 = vmatpush3.msra.mxu1 %v2958_v0  ;;  %v2882_v9 = vmov 0.0|0.0   ;;  %vm662_vm2 = vcmask 261120  }
   0x6   :  { %2466 = vmatprep.mubr.msk.f32.mxu1 %vm2881_vm1, %v2880_v2  ;;  %2469 = vmatprep.subr.mxu1 %v2880_v2  ;;  %v2334_v7 = vld [vmem:[%s3331_s0 + $0xc] sm:$0x3]  ;;  %v2998_v8 = vpack.c.bf16 %v44_v6, %v43_v5  ;;  %v45_v10 = vld [vmem:[%s3335_s4 + $0x10] sm:$0xff]  ;;  %v46_v11 = vld [vmem:[%s3335_s4 + $0x18] sm:$0xff]  ;;  %s2883_s22 = smov 64   ;;  %s2884_s26 = smov 96  }
   0x7   :  { %2487 = vmatmul.mubr.msk.f32.vlgmr.msra.gmra.mrb[2].mxu0 %vm56_vm0, %v2330_v3  ;;  %2467 = vmatmul.mubr.msk.f32.vlgmr.msra.gmra.mrb[0].mxu1 %vm56_vm0, %v49_v4  ;;  %v3013_v12 = vpack.c.bf16 %v46_v11, %v45_v10  ;;  %v655_v13 = vld [vmem:[%s3332_s1] sm:$0x3]  ;;  %v2324_v37 = vld [vmem:[%s3331_s0 + $0x2] sm:$0x3]  ;;  %v2328_v38 = vld [vmem:[%s3331_s0 + $0x6] sm:$0x3] }
   0x8   :  { %2495 = vmatpush3.msra.mxu0 %v2958_v0  ;;  %2496 = vmatprep.mubr.msk.f32.mxu0 %vm2881_vm1, %v2880_v2  ;;  %v3039_v22 = vld [vmem:[%s3337_s6] ss:$0 sm:$0xff]  ;;  %v2332_v40 = vld [vmem:[%s3331_s0 + $0xa] sm:$0x3]  ;;  %s2885_s29 = smov 32   ;;  %vm769_vm3 = vcmask 253952  }
   0x9   :  { %2678 = vmatprep.subr.bf16.mxu0 %v2882_v9  ;;  %2470 = vmatpush3.msra.mxu1 %v2958_v0  ;;  %v3046_v26 = vld [vmem:[%s3336_s5] ss:$0 sm:$0xff]  ;;  %v2336_v41 = vld [vmem:[%s3331_s0 + $0xe] sm:$0x3]  ;;  %vm771_vm4 = vcmask 254977   ;;  %vm1501_vm5 = vcmask 254976  }
   0xa   :  { %2471 = vmatprep.mubr.msk.f32.mxu1 %vm2881_vm1, %v2880_v2  ;;  %2479 = vmatprep.subr.mxu1 %v2880_v2 }
   0xb   :  { %2497 = vmatmul.mubr.msk.f32.vlgmr.msra.gmra.mrb[4].mxu0 %vm56_vm0, %v2334_v7  ;;  %2472 = vmatmul.mubr.msk.f32.vlgmr.msra.gmra.mrb[2].mxu1 %vm56_vm0, %v2324_v37 }
   0xc   :  { %2680 = vmatpush3.bf16.msra.mxu0 %v2998_v8  ;;  %2512 = vmatprep.mubr.msk.f32.mxu0 %vm2881_vm1, %v2880_v2 }
   0xd   :  { %2681 = vmatprep.subr.bf16.mxu0 %v2882_v9  ;;  %2480 = vmatpush3.msra.mxu1 %v2958_v0 }
   0xe   :  { %2481 = vmatprep.mubr.msk.f32.mxu1 %vm2881_vm1, %v2880_v2  ;;  %2489 = vmatprep.subr.mxu1 %v2880_v2 }
   0xf   :  { %2482 = vmatmul.mubr.msk.f32.vlgmr.msra.gmra.mrb[4].mxu1 %vm56_vm0, %v2328_v38 }
  0x10   :  { %2683 = vmatpush3.bf16.msra.mxu0 %v3013_v12  ;;  %2490 = vmatpush3.msra.mxu1 %v2958_v0 }
  0x11   :  { %2690 = vmatprep.subr.bf16.mxu0 %v2882_v9  ;;  %2491 = vmatprep.mubr.msk.f32.mxu1 %vm2881_vm1, %v2880_v2 }
  0x12   :  { %2499 = vmatprep.subr.mxu1 %v2880_v2 }
  0x13   :  { %2513 = vmatmul.mubr.msk.f32.vlgmr.msra.gmra.mrb[6].mxu0 %vm662_vm2, %v655_v13  ;;  %2492 = vmatmul.mubr.msk.f32.vlgmr.msra.gmra.mrb[6].mxu1 %vm56_vm0, %v2332_v40 }
  0x14   :  { %2692 = vmatpush3.bf16.msra.mxu0 %v2998_v8  ;;  %2534 = vmatprep.mubr.msk.f32.mxu0 %vm2881_vm1, %v2880_v2 }
  0x15   :  { %2693 = vmatprep.subr.bf16.mxu0 %v2882_v9  ;;  %2500 = vmatpush3.msra.mxu1 %v2958_v0 }
  0x16   :  { %2501 = vmatprep.mubr.msk.f32.mxu1 %vm2881_vm1, %v2880_v2  ;;  %2684 = vmatprep.subr.bf16.mxu1 %v2882_v9 }
  0x17   :  { %2502 = vmatmul.mubr.msk.f32.vlgmr.msra.gmra.mrb[8].mxu1 %vm56_vm0, %v2336_v41 }
  0x18   :  { %2695 = vmatpush3.bf16.msra.mxu0 %v3013_v12  ;;  %2686 = vmatpush3.bf16.msra.mxu1 %v2998_v8 }
  0x19   :  { %2702 = vmatprep.subr.bf16.mxu0 %v2882_v9  ;;  %2523 = vmatprep.mubr.msk.f32.mxu1 %vm2881_vm1, %v2880_v2 }
  0x1a   :  { %2687 = vmatprep.subr.bf16.mxu1 %v2882_v9 }
  0x1c   :  { %2689 = vmatpush3.bf16.msra.mxu1 %v3013_v12 }
  0x1d   :  { %2696 = vmatprep.subr.bf16.mxu1 %v2882_v9 }
  0xd6   :  { %v3030_v14 = vpop.f32.mrb[0].mxu0 }
  0xd7   :  { %v2478_v15 = vpop.f32.mrb[1].mxu0 }
  0xda   :  { %v3032_v16 = vpop.f32.mrb[2].mxu0  ;;  %v126_v17 = vpop.f32.mrb[0].mxu1 }
  0xdb   :  { %v2488_v18 = vpop.f32.mrb[3].mxu0  ;;  %v2468_v19 = vpop.f32.mrb[1].mxu1  ;;  %v127_v27 = vadd.f32 %v3046_v26, %v126_v17 }
  0xde   :  { %v3034_v20 = vpop.f32.mrb[4].mxu0  ;;  %v201_v48 = vpop.f32.mrb[2].mxu1 }
  0xdf   :  { %v2498_v21 = vpop.f32.mrb[5].mxu0  ;;  %v2473_v49 = vpop.f32.mrb[3].mxu1  ;;  %v202_v60 = vadd.f32 %v3046_v26, %v201_v48 }
  0xe2   :  { %v3086_v50 = vpop.f32.mrb[4].mxu1 }
  0xe3   :  { %v2483_v51 = vpop.f32.mrb[5].mxu1 }
  0xe6   :  { %v732_v23 = vpop.f32.mrb[6].mxu0  ;;  %v3088_v52 = vpop.f32.mrb[6].mxu1 }
  0xe7   :  { %v733_v24 = vadd.f32 %v3039_v22, %v732_v23  ;;  %v2514_v25 = vpop.f32.mrb[7].mxu0  ;;  %v2493_v53 = vpop.f32.mrb[7].mxu1 }
  0xe9   :  { %744 = vrot.lane.b32.xlu0 %v733_v24, %s2883_s22  ;;  %v736_v28 = vadd.f32 %v733_v24, %v127_v27  ;;  %v277_v24 = vadd.f32 %v3046_v26, %v3030_v14 }
  0xea   :  { %v3090_v54 = vpop.f32.mrb[8].mxu1 }
  0xeb   :  { %v2340_v29 = vmul.f32 -1.442695, %v736_v28  ;;  %v2503_v55 = vpop.f32.mrb[9].mxu1 }
  0xed   :  { %2772 = vpow2.f32 %v2340_v29 }
  0xf7   :  { %v2773_v30 = vpop.eup %2772 }
  0xf8   :  { %v740_v31 = vadd.f32 1.0, %v2773_v30 }
  0xfa   :  { %2774 = vrcp.f32 %v740_v31 }
 0x104   :  { %v2775_v32 = vpop.eup %2774 }
 0x105   :  { %v754_v43 = vsub.f32 1.0, %v2775_v32 }
 0x15b   :  { %v745_v33 = vpop.permute.xlu0 %744 }
 0x15c   :  { %v747_v34 = vmul.f32 %v2775_v32, %v745_v33 }
 0x15e   :  { %749 = vrot.lane.b32.xlu0 %v747_v34, %s2883_s22 }
 0x1d0   :  { %v750_v35 = vpop.permute.xlu0 %749 }
 0x1d1   :  { %v752_v36 = vadd.f32 %v750_v35, %v127_v27 }
 0x1d3   :  { %2776 = vtanh.f32 %v752_v36 }
 0x1dd   :  { %v2777_v39 = vpop.eup %2776 }
 0x1de   :  { %756 = vrot.lane.b32.xlu1 %v2777_v39, %s2884_s26 }
 0x1e2   :  { %760 = vrot.lane.b32.xlu1 %v655_v13, %s2885_s29 }
 0x250   :  { %v757_v42 = vpop.permute.xlu1 %756 }
 0x251   :  { %v759_v45 = vmul.f32 %v757_v42, %v754_v43 }
 0x254   :  { %v761_v44 = vpop.permute.xlu1 %760 }
 0x255   :  { %v763_v46 = vmul.f32 %v2775_v32, %v761_v44  ;;  %v352_v44 = vadd.f32 %v3046_v26, %v3086_v50 }
 0x257   :  { %v764_v47 = vadd.f32 %v763_v46, %v759_v45 }
 0x259   :  { %766 = vrot.lane.b32.xlu0 %v764_v47, %s2884_s26 }
 0x2cb   :  { %v767_v56 = vpop.permute.xlu0 %766 }
 0x2cc   :  { %770 = vst.msk [vmem:[#allocation2] sm:$0x1] %vm769_vm3, %v767_v56  ;;  %2524 = vmatmul.mubr.msk.f32.vlgmr.msra.gmra.mrb[10].mxu1 %vm662_vm2, %v767_v56 }
 0x2cd   :  { %772 = vst.msk [vmem:[#allocation2 + $0x7] sm:$0x2] %vm771_vm4, %v767_v56  ;;  %2698 = vmatpush3.bf16.msra.mxu1 %v2998_v8  ;;  %2545 = vmatprep.mubr.msk.f32.mxu1 %vm2881_vm1, %v2880_v2 }
 0x2ce   :  { %2699 = vmatprep.subr.bf16.mxu1 %v2882_v9 }
 0x2d1   :  { %2701 = vmatpush3.bf16.msra.mxu1 %v3013_v12 }
 0x2d2   :  { %2708 = vmatprep.subr.bf16.mxu1 %v2882_v9 }
 0x39f   :  { %v841_v57 = vpop.f32.mrb[10].mxu1 }
 0x3a0   :  { %v842_v58 = vadd.f32 %v3039_v22, %v841_v57  ;;  %v2525_v59 = vpop.f32.mrb[11].mxu1 }
 0x3a2   :  { %853 = vrot.lane.b32.xlu1 %v842_v58, %s2883_s22  ;;  %v845_v61 = vadd.f32 %v842_v58, %v202_v60 }
 0x3a4   :  { %v2342_v62 = vmul.f32 -1.442695, %v845_v61 }
 0x3a6   :  { %2778 = vpow2.f32 %v2342_v62 }
 0x3b0   :  { %v2779_v63 = vpop.eup %2778 }
 0x3b1   :  { %v849_v0 = vadd.f32 1.0, %v2779_v63 }
 0x3b3   :  { %2780 = vrcp.f32 %v849_v0 }
 0x3bd   :  { %v2781_v1 = vpop.eup %2780 }
 0x3be   :  { %v863_v10 = vsub.f32 1.0, %v2781_v1  ;;  %v869_v13 = vmul.f32 %v2781_v1, %v764_v47 }
 0x414   :  { %v854_v3 = vpop.permute.xlu1 %853 }
 0x415   :  { %v856_v4 = vmul.f32 %v2781_v1, %v854_v3  ;;  %v427_v3 = vadd.f32 %v3046_v26, %v3032_v16 }
 0x417   :  { %858 = vrot.lane.b32.xlu0 %v856_v4, %s2883_s22 }
 0x489   :  { %v859_v5 = vpop.permute.xlu0 %858 }
 0x48a   :  { %v861_v6 = vadd.f32 %v859_v5, %v202_v60 }
 0x48c   :  { %2782 = vtanh.f32 %v861_v6 }
 0x496   :  { %v2783_v7 = vpop.eup %2782 }
 0x497   :  { %865 = vrot.lane.b32.xlu1 %v2783_v7, %s2884_s26 }
 0x509   :  { %v866_v11 = vpop.permute.xlu1 %865 }
 0x50a   :  { %v868_v15 = vmul.f32 %v866_v11, %v863_v10 }
 0x50c   :  { %v870_v17 = vadd.f32 %v869_v13, %v868_v15 }
 0x50e   :  { %872 = vrot.lane.b32.xlu0 %v870_v17, %s2884_s26 }
 0x580   :  { %v873_v18 = vpop.permute.xlu0 %872 }
 0x581   :  { %875 = vst.msk [vmem:[#allocation2 + $0x1] sm:$0x1] %vm769_vm3, %v873_v18  ;;  %2535 = vmatmul.mubr.msk.f32.vlgmr.msra.gmra.mrb[8].mxu0 %vm662_vm2, %v873_v18 }
 0x582   :  { %876 = vst.msk [vmem:[#allocation2 + $0x8] sm:$0x2] %vm771_vm4, %v873_v18  ;;  %2704 = vmatpush3.bf16.msra.mxu0 %v2998_v8  ;;  %2556 = vmatprep.mubr.msk.f32.mxu0 %vm2881_vm1, %v2880_v2 }
 0x583   :  { %2705 = vmatprep.subr.bf16.mxu0 %v2882_v9 }
 0x586   :  { %2707 = vmatpush3.bf16.msra.mxu0 %v3013_v12 }
 0x587   :  { %2714 = vmatprep.subr.bf16.mxu0 %v2882_v9 }
 0x654   :  { %v945_v19 = vpop.f32.mrb[8].mxu0 }
 0x655   :  { %v946_v21 = vadd.f32 %v3039_v22, %v945_v19  ;;  %v2536_v23 = vpop.f32.mrb[9].mxu0 }
 0x657   :  { %957 = vrot.lane.b32.xlu1 %v946_v21, %s2883_s22  ;;  %v949_v25 = vadd.f32 %v946_v21, %v277_v24 }
 0x659   :  { %v2344_v27 = vmul.f32 -1.442695, %v949_v25 }
 0x65b   :  { %2784 = vpow2.f32 %v2344_v27 }
 0x665   :  { %v2785_v28 = vpop.eup %2784 }
 0x666   :  { %v953_v29 = vadd.f32 1.0, %v2785_v28 }
 0x668   :  { %2786 = vrcp.f32 %v953_v29 }
 0x672   :  { %v2787_v30 = vpop.eup %2786 }
 0x673   :  { %v967_v36 = vsub.f32 1.0, %v2787_v30  ;;  %v973_v14 = vmul.f32 %v2787_v30, %v870_v17 }
 0x6c9   :  { %v958_v31 = vpop.permute.xlu1 %957 }
 0x6ca   :  { %v960_v32 = vmul.f32 %v2787_v30, %v958_v31  ;;  %v502_v30 = vadd.f32 %v3046_v26, %v3088_v52 }
 0x6cc   :  { %962 = vrot.lane.b32.xlu0 %v960_v32, %s2883_s22 }
 0x73e   :  { %v963_v33 = vpop.permute.xlu0 %962 }
 0x73f   :  { %v965_v34 = vadd.f32 %v963_v33, %v277_v24 }
 0x741   :  { %2788 = vtanh.f32 %v965_v34 }
 0x74b   :  { %v2789_v35 = vpop.eup %2788 }
 0x74c   :  { %969 = vrot.lane.b32.xlu1 %v2789_v35, %s2884_s26 }
 0x7be   :  { %v970_v37 = vpop.permute.xlu1 %969 }
 0x7bf   :  { %v972_v38 = vmul.f32 %v970_v37, %v967_v36 }
 0x7c1   :  { %v974_v39 = vadd.f32 %v973_v14, %v972_v38 }
 0x7c3   :  { %976 = vrot.lane.b32.xlu0 %v974_v39, %s2884_s26 }
 0x835   :  { %v977_v40 = vpop.permute.xlu0 %976 }
 0x836   :  { %979 = vst.msk [vmem:[#allocation2 + $0x2] sm:$0x1] %vm769_vm3, %v977_v40  ;;  %2546 = vmatmul.mubr.msk.f32.vlgmr.msra.gmra.mrb[12].mxu1 %vm662_vm2, %v977_v40 }
 0x837   :  { %980 = vst.msk [vmem:[#allocation2 + $0x9] sm:$0x2] %vm771_vm4, %v977_v40  ;;  %2710 = vmatpush3.bf16.msra.mxu1 %v2998_v8  ;;  %2567 = vmatprep.mubr.msk.f32.mxu1 %vm2881_vm1, %v2880_v2 }
 0x838   :  { %2711 = vmatprep.subr.bf16.mxu1 %v2882_v9 }
 0x83b   :  { %2713 = vmatpush3.bf16.msra.mxu1 %v3013_v12 }
 0x83c   :  { %2720 = vmatprep.subr.bf16.mxu1 %v2882_v9 }
 0x909   :  { %v1049_v41 = vpop.f32.mrb[12].mxu1 }
 0x90a   :  { %v1050_v42 = vadd.f32 %v3039_v22, %v1049_v41  ;;  %v2547_v43 = vpop.f32.mrb[13].mxu1 }
 0x90c   :  { %1061 = vrot.lane.b32.xlu1 %v1050_v42, %s2883_s22  ;;  %v1053_v45 = vadd.f32 %v1050_v42, %v352_v44 }
 0x90e   :  { %v2346_v46 = vmul.f32 -1.442695, %v1053_v45 }
 0x910   :  { %2790 = vpow2.f32 %v2346_v46  ;;  %v577_v46 = vadd.f32 %v3046_v26, %v3034_v20 }
 0x91a   :  { %v2791_v47 = vpop.eup %2790 }
 0x91b   :  { %v1057_v48 = vadd.f32 1.0, %v2791_v47 }
 0x91d   :  { %2792 = vrcp.f32 %v1057_v48 }
 0x927   :  { %v2793_v49 = vpop.eup %2792 }
 0x928   :  { %v1071_v58 = vsub.f32 1.0, %v2793_v49  ;;  %v1077_v50 = vmul.f32 %v2793_v49, %v974_v39 }
 0x97e   :  { %v1062_v51 = vpop.permute.xlu1 %1061 }
 0x97f   :  { %v1064_v53 = vmul.f32 %v2793_v49, %v1062_v51 }
 0x981   :  { %1066 = vrot.lane.b32.xlu0 %v1064_v53, %s2883_s22 }
 0x9f3   :  { %v1067_v55 = vpop.permute.xlu0 %1066 }
 0x9f4   :  { %v1069_v56 = vadd.f32 %v1067_v55, %v352_v44 }
 0x9f6   :  { %2794 = vtanh.f32 %v1069_v56 }
 0xa00   :  { %v2795_v57 = vpop.eup %2794 }
 0xa01   :  { %1073 = vrot.lane.b32.xlu1 %v2795_v57, %s2884_s26 }
 0xa73   :  { %v1074_v59 = vpop.permute.xlu1 %1073 }
 0xa74   :  { %v1076_v60 = vmul.f32 %v1074_v59, %v1071_v58 }
 0xa76   :  { %v1078_v61 = vadd.f32 %v1077_v50, %v1076_v60 }
 0xa78   :  { %1080 = vrot.lane.b32.xlu0 %v1078_v61, %s2884_s26 }
 0xaea   :  { %v1081_v62 = vpop.permute.xlu0 %1080 }
 0xaeb   :  { %1083 = vst.msk [vmem:[#allocation2 + $0x3] sm:$0x1] %vm769_vm3, %v1081_v62  ;;  %2557 = vmatmul.mubr.msk.f32.vlgmr.msra.gmra.mrb[10].mxu0 %vm662_vm2, %v1081_v62 }
 0xaec   :  { %1084 = vst.msk [vmem:[#allocation2 + $0xa] sm:$0x2] %vm771_vm4, %v1081_v62  ;;  %2716 = vmatpush3.bf16.msra.mxu0 %v2998_v8  ;;  %2578 = vmatprep.mubr.msk.f32.mxu0 %vm2881_vm1, %v2880_v2 }
 0xaed   :  { %2717 = vmatprep.subr.bf16.mxu0 %v2882_v9 }
 0xaf0   :  { %2719 = vmatpush3.bf16.msra.mxu0 %v3013_v12 }
 0xaf1   :  { %2592 = vmatprep.subr.mxu0 %v2880_v2 }
 0xbbe   :  { %v1153_v63 = vpop.f32.mrb[10].mxu0 }
 0xbbf   :  { %v1154_v0 = vadd.f32 %v3039_v22, %v1153_v63  ;;  %v2558_v1 = vpop.f32.mrb[11].mxu0 }
 0xbc1   :  { %1165 = vrot.lane.b32.xlu1 %v1154_v0, %s2883_s22  ;;  %v1157_v4 = vadd.f32 %v1154_v0, %v427_v3 }
 0xbc3   :  { %v2348_v5 = vmul.f32 -1.442695, %v1157_v4  ;;  %v652_v4 = vadd.f32 %v3046_v26, %v3090_v54  ;;  %v1517_v26 = vld [vmem:[%s3333_s2] sm:$0xff] }
 0xbc5   :  { %2796 = vpow2.f32 %v2348_v5 }
 0xbcf   :  { %v2797_v6 = vpop.eup %2796 }
 0xbd0   :  { %v1161_v7 = vadd.f32 1.0, %v2797_v6 }
 0xbd2   :  { %2798 = vrcp.f32 %v1161_v7 }
 0xbdc   :  { %v2799_v10 = vpop.eup %2798 }
 0xbdd   :  { %v1175_v19 = vsub.f32 1.0, %v2799_v10  ;;  %v1181_v16 = vmul.f32 %v2799_v10, %v1078_v61 }
 0xc33   :  { %v1166_v11 = vpop.permute.xlu1 %1165 }
 0xc34   :  { %v1168_v13 = vmul.f32 %v2799_v10, %v1166_v11 }
 0xc36   :  { %1170 = vrot.lane.b32.xlu0 %v1168_v13, %s2883_s22 }
 0xca8   :  { %v1171_v15 = vpop.permute.xlu0 %1170 }
 0xca9   :  { %v1173_v17 = vadd.f32 %v1171_v15, %v427_v3 }
 0xcab   :  { %2800 = vtanh.f32 %v1173_v17 }
 0xcb5   :  { %v2801_v18 = vpop.eup %2800 }
 0xcb6   :  { %1177 = vrot.lane.b32.xlu1 %v2801_v18, %s2884_s26 }
 0xd28   :  { %v1178_v21 = vpop.permute.xlu1 %1177 }
 0xd29   :  { %v1180_v23 = vmul.f32 %v1178_v21, %v1175_v19 }
 0xd2b   :  { %v1182_v24 = vadd.f32 %v1181_v16, %v1180_v23 }
 0xd2d   :  { %1184 = vrot.lane.b32.xlu0 %v1182_v24, %s2884_s26 }
 0xd9f   :  { %v1185_v25 = vpop.permute.xlu0 %1184 }
 0xda0   :  { %1187 = vst.msk [vmem:[#allocation2 + $0x4] sm:$0x1] %vm769_vm3, %v1185_v25  ;;  %2568 = vmatmul.mubr.msk.f32.vlgmr.msra.gmra.mrb[14].mxu1 %vm662_vm2, %v1185_v25 }
 0xda1   :  { %1188 = vst.msk [vmem:[#allocation2 + $0xb] sm:$0x2] %vm771_vm4, %v1185_v25  ;;  %2722 = vmatpush3.bf16.msra.mxu1 %v2998_v8  ;;  %2589 = vmatprep.mubr.msk.f32.mxu1 %vm2881_vm1, %v2880_v2  ;;  %v1507_v25 = vld [vmem:[%s3338_s7 + $0x20] sm:$0xff] }
 0xda2   :  { %2723 = vmatprep.subr.bf16.mxu1 %v2882_v9 }
 0xda5   :  { %2725 = vmatpush3.bf16.msra.mxu1 %v3013_v12 }
 0xda6   :  { %2597 = vmatprep.subr.mxu1 %v2880_v2 }
 0xe73   :  { %v1257_v27 = vpop.f32.mrb[14].mxu1 }
 0xe74   :  { %v1258_v28 = vadd.f32 %v3039_v22, %v1257_v27  ;;  %v2569_v29 = vpop.f32.mrb[15].mxu1  ;;  %v1508_v27 = vld [vmem:[%s3338_s7 + $0x28] sm:$0xff] }
 0xe75   :  { %v1509_v29 = vld [vmem:[%s3338_s7 + $0x30] sm:$0xff] }
 0xe76   :  { %1269 = vrot.lane.b32.xlu1 %v1258_v28, %s2883_s22  ;;  %v1261_v31 = vadd.f32 %v1258_v28, %v502_v30  ;;  %v3209_v28 = vpack.c.bf16 %v1508_v27, %v1507_v25 }
 0xe78   :  { %v2350_v8 = vmul.f32 -1.442695, %v1261_v31 }
 0xe7a   :  { %2802 = vpow2.f32 %v2350_v8 }
 0xe84   :  { %v2803_v32 = vpop.eup %2802 }
 0xe85   :  { %v1265_v33 = vadd.f32 1.0, %v2803_v32 }
 0xe87   :  { %2804 = vrcp.f32 %v1265_v33 }
 0xe91   :  { %v2805_v34 = vpop.eup %2804 }
 0xe92   :  { %v1279_v38 = vsub.f32 1.0, %v2805_v34  ;;  %v1285_v52 = vmul.f32 %v2805_v34, %v1182_v24 }
 0xee8   :  { %v1270_v35 = vpop.permute.xlu1 %1269 }
 0xee9   :  { %v1272_v12 = vmul.f32 %v2805_v34, %v1270_v35 }
 0xeeb   :  { %1274 = vrot.lane.b32.xlu0 %v1272_v12, %s2883_s22 }
 0xf5d   :  { %v1275_v36 = vpop.permute.xlu0 %1274 }
 0xf5e   :  { %v1277_v37 = vadd.f32 %v1275_v36, %v502_v30  ;;  %v1510_v30 = vld [vmem:[%s3338_s7 + $0x38] sm:$0xff] }
 0xf5f   :  { %v3219_v8 = vpack.c.bf16 %v1510_v30, %v1509_v29 }
 0xf60   :  { %2806 = vtanh.f32 %v1277_v37 }
 0xf6a   :  { %v2807_v14 = vpop.eup %2806 }
 0xf6b   :  { %1281 = vrot.lane.b32.xlu1 %v2807_v14, %s2884_s26 }
 0xfdd   :  { %v1282_v39 = vpop.permute.xlu1 %1281 }
 0xfde   :  { %v1284_v40 = vmul.f32 %v1282_v39, %v1279_v38 }
 0xfe0   :  { %v1286_v41 = vadd.f32 %v1285_v52, %v1284_v40  ;;  %v1503_v40 = vld [vmem:[%s3338_s7] sm:$0xff] }
 0xfe2   :  { %1288 = vrot.lane.b32.xlu0 %v1286_v41, %s2884_s26 }
0x1054   :  { %v1289_v42 = vpop.permute.xlu0 %1288 }
0x1055   :  { %1291 = vst.msk [vmem:[#allocation2 + $0x5] sm:$0x1] %vm769_vm3, %v1289_v42  ;;  %2579 = vmatmul.mubr.msk.f32.vlgmr.msra.gmra.mrb[12].mxu0 %vm662_vm2, %v1289_v42 }
0x1056   :  { %1292 = vst.msk [vmem:[#allocation2 + $0xc] sm:$0x2] %vm771_vm4, %v1289_v42  ;;  %2594 = vmatprep.mubr.msk.f32.mxu0 %vm2881_vm1, %v2880_v2  ;;  %2593 = vmatpush3.xpose.msk.msra.mxu0 %vm662_vm2, %v1517_v26 }
0x1057   :  { %2726 = vmatprep.subr.bf16.mxu0 %v2882_v9 }
0x1128   :  { %v1361_v43 = vpop.f32.mrb[12].mxu0 }
0x1129   :  { %v1362_v44 = vadd.f32 %v3039_v22, %v1361_v43  ;;  %v2580_v45 = vpop.f32.mrb[13].mxu0 }
0x112a   :  { %v1505_v45 = vld [vmem:[%s3338_s7 + $0x10] sm:$0xff] }
0x112b   :  { %1373 = vrot.lane.b32.xlu1 %v1362_v44, %s2883_s22  ;;  %v1365_v47 = vadd.f32 %v1362_v44, %v577_v46 }
0x112d   :  { %v2352_v48 = vmul.f32 -1.442695, %v1365_v47 }
0x112f   :  { %2808 = vpow2.f32 %v2352_v48  ;;  %v2363_v48 = vld [vmem:[%s3333_s2 + $0x8] sm:$0xff] }
0x1139   :  { %v2809_v49 = vpop.eup %2808 }
0x113a   :  { %v1369_v51 = vadd.f32 1.0, %v2809_v49 }
0x113c   :  { %2810 = vrcp.f32 %v1369_v51 }
0x1146   :  { %v2811_v53 = vpop.eup %2810 }
0x1147   :  { %v1383_v50 = vsub.f32 1.0, %v2811_v53  ;;  %v1389_v20 = vmul.f32 %v2811_v53, %v1286_v41  ;;  %v1504_v41 = vld [vmem:[%s3338_s7 + $0x8] sm:$0xff] }
0x1148   :  { %v3237_v43 = vpack.c.bf16 %v1504_v41, %v1503_v40 }
0x119d   :  { %v1374_v55 = vpop.permute.xlu1 %1373 }
0x119e   :  { %v1376_v56 = vmul.f32 %v2811_v53, %v1374_v55  ;;  %v1512_v55 = vld [vmem:[%s3340_s9] sm:$0xff] }
0x11a0   :  { %1378 = vrot.lane.b32.xlu0 %v1376_v56, %s2883_s22  ;;  %v1513_v56 = vld [vmem:[%s3340_s9 + $0x8] sm:$0xff] }
0x1212   :  { %v1379_v57 = vpop.permute.xlu0 %1378 }
0x1213   :  { %v1381_v58 = vadd.f32 %v1379_v57, %v577_v46  ;;  %v1506_v46 = vld [vmem:[%s3338_s7 + $0x18] sm:$0xff]  ;;  %v1514_v57 = vld [vmem:[%s3340_s9 + $0x10] sm:$0xff] }
0x1214   :  { %v3247_v47 = vpack.c.bf16 %v1506_v46, %v1505_v45 }
0x1215   :  { %2812 = vtanh.f32 %v1381_v58  ;;  %v2739_v58 = vpack.c.bf16 %v1513_v56, %v1512_v55 }
0x121f   :  { %v2813_v59 = vpop.eup %2812 }
0x1220   :  { %1385 = vrot.lane.b32.xlu1 %v2813_v59, %s2884_s26  ;;  %v1515_v59 = vld [vmem:[%s3340_s9 + $0x18] sm:$0xff] }
0x1292   :  { %v1386_v60 = vpop.permute.xlu1 %1385 }
0x1293   :  { %v1388_v61 = vmul.f32 %v1386_v60, %v1383_v50  ;;  %v2742_v50 = vpack.c.bf16 %v1515_v59, %v1514_v57  ;;  %v2360_v60 = vld [vmem:[%s3339_s8] ss:$0 sm:$0xff] }
0x1295   :  { %v1390_v62 = vadd.f32 %v1389_v20, %v1388_v61 }
0x1297   :  { %1392 = vrot.lane.b32.xlu0 %v1390_v62, %s2884_s26 }
0x1309   :  { %v1393_v63 = vpop.permute.xlu0 %1392 }
0x130a   :  { %1395 = vst.msk [vmem:[#allocation2 + $0x6] sm:$0x1] %vm769_vm3, %v1393_v63  ;;  %2590 = vmatmul.mubr.msk.f32.vlgmr.msra.gmra.mrb[16].mxu1 %vm662_vm2, %v1393_v63 }
0x130b   :  { %1396 = vst.msk [vmem:[#allocation2 + $0xd] sm:$0x2] %vm771_vm4, %v1393_v63  ;;  %2599 = vmatprep.mubr.msk.f32.mxu1 %vm2881_vm1, %v2880_v2  ;;  %2598 = vmatpush3.msra.mxu1 %v1517_v26 }
0x130c   :  { %2732 = vmatprep.subr.bf16.mxu1 %v2882_v9 }
0x13dd   :  { %v1465_v0 = vpop.f32.mrb[16].mxu1 }
0x13de   :  { %v1466_v1 = vadd.f32 %v3039_v22, %v1465_v0  ;;  %v2591_v3 = vpop.f32.mrb[17].mxu1 }
0x13e0   :  { %1477 = vrot.lane.b32.xlu1 %v1466_v1, %s2883_s22  ;;  %v1469_v5 = vadd.f32 %v1466_v1, %v652_v4 }
0x13e2   :  { %v2354_v6 = vmul.f32 -1.442695, %v1469_v5 }
0x13e4   :  { %2814 = vpow2.f32 %v2354_v6 }
0x13ee   :  { %v2815_v7 = vpop.eup %2814 }
0x13ef   :  { %v1473_v10 = vadd.f32 1.0, %v2815_v7 }
0x13f1   :  { %2816 = vrcp.f32 %v1473_v10 }
0x13fb   :  { %v2817_v11 = vpop.eup %2816 }
0x13fc   :  { %v1487_v54 = vsub.f32 1.0, %v2817_v11  ;;  %v1493_v21 = vmul.f32 %v2817_v11, %v1390_v62 }
0x1452   :  { %v1478_v13 = vpop.permute.xlu1 %1477 }
0x1453   :  { %v1480_v15 = vmul.f32 %v2817_v11, %v1478_v13  ;;  %v2361_v13 = vld [vmem:[%s3341_s10] ss:$0 sm:$0xff]  ;;  %s2886_s10 = smov [#allocation5]  }
0x1454   :  { %s2310_s17 = sshll.u32 %s2886_s10, 4  ;;  %s2311_s17 = int_to_ptr.vmem [resolvable:$true] %s2310_s17 }
0x1455   :  { %1482 = vrot.lane.b32.xlu0 %v1480_v15, %s2883_s22  ;;  %s2832_s18 = scalar_lea.vmem %s2311_s17, 32  ;;  %p2837_p1 = scmp.lt.s32.totalorder %s2311_s17, %s2311_s17 }
0x1456   :  { %p2833_p0 = scmp.ne.s32.totalorder %s2311_s17, %s2832_s18  ;;  %p2838_p2 = scmp.lt.s32.totalorder %s2832_s18, %s2832_s18 }
0x1458   :  { %p2839_p3 = por %p2838_p2, %p2837_p1 }
0x145a   :  { %p2840_p4 = pnand %p2839_p3, %p2833_p0 }
0x14c7   :  { %v1483_v17 = vpop.permute.xlu0 %1482 }
0x14c8   :  { %v1485_v18 = vadd.f32 %v1483_v17, %v652_v4 }
0x14ca   :  { %2818 = vtanh.f32 %v1485_v18 }
0x14d4   :  { %v2819_v22 = vpop.eup %2818 }
0x14d5   :  { %1489 = vrot.lane.b32.xlu1 %v2819_v22, %s2884_s26 }
0x1547   :  { %v1490_v19 = vpop.permute.xlu1 %1489 }
0x1548   :  { %v1492_v16 = vmul.f32 %v1490_v19, %v1487_v54 }
0x154a   :  { %v1494_v23 = vadd.f32 %v1493_v21, %v1492_v16 }
0x154c   :  { %1496 = vrot.lane.b32.xlu0 %v1494_v23, %s2884_s26 }
0x15be   :  { %v1497_v24 = vpop.permute.xlu0 %1496 }
0x15bf   :  { %1499 = vst.msk [vmem:[#allocation2 + $0x7] sm:$0x1] %vm769_vm3, %v1497_v24 }
0x15c0   :  { %1500 = vst.msk [vmem:[#allocation2 + $0xe] sm:$0x2] %vm771_vm4, %v1497_v24 }
0x15c1   :  { %1502 = vst.msk [vmem:[#allocation5] sm:$0x3] %vm1501_vm5, %v1497_v24 }
0x15c6   :  { %v1518_v31 = vld [vmem:[#allocation2] sm:$0xff] }
0x15c7   :  { %2595 = vmatmul.mubr.msk.f32.vlgmr.msra.gmra.mrb[14].mxu0 %vm662_vm2, %v1518_v31  ;;  %v1912_v53 = vld [vmem:[#allocation2 + $0x8] sm:$0xff] }
0x15c8   :  { %2728 = vmatpush3.bf16.msra.mxu0 %v3209_v28  ;;  %2610 = vmatprep.mubr.msk.f32.mxu0 %vm2881_vm1, %v2880_v2 }
0x15c9   :  { %2729 = vmatprep.subr.bf16.mxu0 %v2882_v9 }
0x15cc   :  { %2731 = vmatpush3.bf16.msra.mxu0 %v3219_v8 }
0x15cd   :  { %2738 = vmatprep.subr.bf16.mxu0 %v2882_v9 }
0x15cf   :  { %2611 = vmatmul.mubr.msk.f32.vlgmr.msra.gmra.mrb[16].mxu0 %vm662_vm2, %v1518_v31 }
0x15d0   :  { %2632 = vmatprep.mubr.msk.f32.mxu0 %vm2881_vm1, %v2880_v2  ;;  %2740 = vmatpush3.bf16.msra.mxu0 %v2739_v58 }
0x15d1   :  { %2741 = vmatprep.subr.bf16.mxu0 %v2882_v9 }
0x15d4   :  { %2743 = vmatpush3.bf16.msra.mxu0 %v2742_v50 }
0x15d5   :  { %2744 = vmatprep.subr.bf16.mxu0 %v2882_v9 }
0x169a   :  { %v1591_v32 = vpop.f32.mrb[14].mxu0 }
0x169b   :  { %v2596_v33 = vpop.f32.mrb[15].mxu0  ;;  %v1595_v34 = vsel %vm56_vm0, %v1591_v32, -inf }
0x169c   :  { %1596 = vmax.xlane.f32.xlu1 %v1595_v34 }
0x16a2   :  { %v1745_v35 = vpop.f32.mrb[16].mxu0 }
0x16a3   :  { %v2612_v12 = vpop.f32.mrb[17].mxu0 }
0x1729   :  { %v1597_v36 = vpop.xlane.xlu1 %1596 }
0x172a   :  { %v1598_v37 = vsub.f32 %v1591_v32, %v1597_v36 }
0x172c   :  { %v1599_v14 = vmul.f32 1.442695, %v1598_v37 }
0x172e   :  { %2820 = vpow2.f32 %v1599_v14 }
0x1738   :  { %v2821_v38 = vpop.eup %2820 }
0x1739   :  { %v1601_v39 = vsel %vm56_vm0, %v2821_v38, 0.0 }
0x173a   :  { %1602 = vadd.xlane.f32.xlu0 %v1601_v39 }
0x17c7   :  { %v1603_v52 = vpop.xlane.xlu0 %1602 }
0x17c8   :  { %2822 = vrcp.f32 %v1603_v52 }
0x17d2   :  { %v2823_v42 = vpop.eup %2822 }
0x17d3   :  { %v1605_v44 = vmul.f32 %v2823_v42, %v2821_v38 }
0x17d5   :  { %2600 = vmatmul.mubr.msk.f32.vlgmr.msra.gmra.mrb[18].mxu1 %vm56_vm0, %v1605_v44 }
0x17d6   :  { %2734 = vmatpush3.bf16.msra.mxu1 %v3237_v43  ;;  %2621 = vmatprep.mubr.msk.f32.mxu1 %vm2881_vm1, %v2880_v2 }
0x17d7   :  { %2735 = vmatprep.subr.bf16.mxu1 %v2882_v9 }
0x17da   :  { %2737 = vmatpush3.bf16.msra.mxu1 %v3247_v47 }
0x17db   :  { %2635 = vmatprep.subr.mxu1 %v2880_v2 }
0x18a8   :  { %v1675_v49 = vpop.f32.mrb[18].mxu1 }
0x18a9   :  { %v2601_v51 = vpop.f32.mrb[19].mxu1  ;;  %2622 = vmatmul.mubr.msk.f32.vlgmr.msra.gmra.mrb[20].mxu1 %vm662_vm2, %v1675_v49 }
0x18aa   :  { %2636 = vmatpush3.xpose.msk.msra.mxu1 %vm662_vm2, %v2363_v48  ;;  %2637 = vmatprep.mubr.msk.f32.mxu1 %vm2881_vm1, %v2880_v2 }
0x18ab   :  { %2640 = vmatprep.subr.mxu1 %v2880_v2 }
0x18ad   :  { %2638 = vmatmul.mubr.msk.f32.vlgmr.msra.gmra.mrb[22].mxu1 %vm662_vm2, %v1912_v53 }
0x18ae   :  { %2641 = vmatpush3.msra.mxu1 %v2363_v48  ;;  %2642 = vmatprep.mubr.msk.f32.mxu1 %vm2881_vm1, %v2880_v2 }
0x18af   :  { %2750 = vmatprep.subr.bf16.mxu1 %v2882_v9 }
0x197c   :  { %v1818_v20 = vpop.f32.mrb[20].mxu1 }
0x197d   :  { %v1819_v61 = vadd.f32 %v1818_v20, %v1745_v35  ;;  %v2623_v62 = vpop.f32.mrb[21].mxu1 }
0x197f   :  { %v1828_v63 = vadd.f32 %v2360_v60, %v1819_v61 }
0x1980   :  { %v1985_v0 = vpop.f32.mrb[22].mxu1 }
0x1981   :  { %2824 = vtanh.f32 %v1828_v63  ;;  %v2639_v1 = vpop.f32.mrb[23].mxu1  ;;  %v1989_v3 = vsel %vm56_vm0, %v1985_v0, -inf }
0x1982   :  { %1990 = vmax.xlane.f32.xlu0 %v1989_v3 }
0x198b   :  { %v2825_v4 = vpop.eup %2824 }
0x198c   :  { %2633 = vmatmul.mubr.msk.f32.vlgmr.msra.gmra.mrb[18].mxu0 %vm662_vm2, %v2825_v4 }
0x198d   :  { %2746 = vmatpush3.bf16.msra.mxu0 %v3209_v28  ;;  %2653 = vmatprep.mubr.msk.f32.mxu0 %vm2881_vm1, %v2880_v2 }
0x198e   :  { %2747 = vmatprep.subr.bf16.mxu0 %v2882_v9 }
0x1991   :  { %2749 = vmatpush3.bf16.msra.mxu0 %v3219_v8 }
0x1992   :  { %2756 = vmatprep.subr.bf16.mxu0 %v2882_v9 }
0x1994   :  { %2654 = vmatmul.mubr.msk.f32.vlgmr.msra.gmra.mrb[20].mxu0 %vm662_vm2, %v1912_v53 }
0x1995   :  { %2758 = vmatpush3.bf16.msra.mxu0 %v2739_v58  ;;  %2675 = vmatprep.mubr.msk.f32.mxu0 %vm2881_vm1, %v2880_v2 }
0x1996   :  { %2759 = vmatprep.subr.bf16.mxu0 %v2882_v9 }
0x1999   :  { %2761 = vmatpush3.bf16.msra.mxu0 %v2742_v50 }
0x1a0f   :  { %v1991_v5 = vpop.xlane.xlu0 %1990 }
0x1a10   :  { %v1992_v6 = vsub.f32 %v1985_v0, %v1991_v5 }
0x1a12   :  { %v1993_v7 = vmul.f32 1.442695, %v1992_v6 }
0x1a14   :  { %2826 = vpow2.f32 %v1993_v7 }
0x1a1e   :  { %v2827_v10 = vpop.eup %2826 }
0x1a1f   :  { %v1995_v11 = vsel %vm56_vm0, %v2827_v10, 0.0 }
0x1a20   :  { %1996 = vadd.xlane.f32.xlu1 %v1995_v11 }
0x1a5f   :  { %v1905_v15 = vpop.f32.mrb[18].mxu0 }
0x1a60   :  { %v1906_v17 = vadd.f32 %v2361_v13, %v1905_v15  ;;  %v2634_v18 = vpop.f32.mrb[19].mxu0 }
0x1a62   :  { %1909 = vst [vmem:[#allocation3] sm:$0xff] %v1906_v17 }
0x1a67   :  { %v2139_v22 = vpop.f32.mrb[20].mxu0 }
0x1a68   :  { %v2655_v26 = vpop.f32.mrb[21].mxu0 }
0x1aad   :  { %v1997_v54 = vpop.xlane.xlu1 %1996 }
0x1aae   :  { %2828 = vrcp.f32 %v1997_v54 }
0x1ab8   :  { %v2829_v19 = vpop.eup %2828 }
0x1ab9   :  { %v1999_v21 = vmul.f32 %v2829_v19, %v2827_v10 }
0x1abb   :  { %2643 = vmatmul.mubr.msk.f32.vlgmr.msra.gmra.mrb[24].mxu1 %vm56_vm0, %v1999_v21 }
0x1abc   :  { %2752 = vmatpush3.bf16.msra.mxu1 %v3237_v43  ;;  %2664 = vmatprep.mubr.msk.f32.mxu1 %vm2881_vm1, %v2880_v2 }
0x1abd   :  { %2753 = vmatprep.subr.bf16.mxu1 %v2882_v9 }
0x1ac0   :  { %2755 = vmatpush3.bf16.msra.mxu1 %v3247_v47 }
0x1b8e   :  { %v2069_v16 = vpop.f32.mrb[24].mxu1 }
0x1b8f   :  { %v2644_v23 = vpop.f32.mrb[25].mxu1  ;;  %2665 = vmatmul.mubr.msk.f32.vlgmr.msra.gmra.mrb[26].mxu1 %vm662_vm2, %v2069_v16 }
0x1c62   :  { %v2212_v24 = vpop.f32.mrb[26].mxu1 }
0x1c63   :  { %v2213_v25 = vadd.f32 %v2212_v24, %v2139_v22  ;;  %v2666_v27 = vpop.f32.mrb[27].mxu1 }
0x1c65   :  { %v2216_v28 = vadd.f32 %v2360_v60, %v2213_v25 }
0x1c67   :  { %2830 = vtanh.f32 %v2216_v28 }
0x1c71   :  { %v2831_v29 = vpop.eup %2830 }
0x1c72   :  { %2676 = vmatmul.mubr.msk.f32.vlgmr.msra.gmra.mrb[22].mxu0 %vm662_vm2, %v2831_v29 }
0x1c73   :  { %2843 = shalt.err (!%p2840_p4)
}
0x1c74   :  { %s2844_s20 = scalar_lea.hbm %s3343_s12, 32 }
0x1c75   :  { %p2845_p5 = scmp.ne.s32.totalorder %s3343_s12, %s2844_s20  ;;  %p2848_p6 = scmp.lt.u32.totalorder %s2844_s20, %s3343_s12 }
0x1c77   :  { %p2850_p7 = pnand %p2848_p6, %p2845_p5 }
0x1c79   :  { %2853 = shalt.err (!%p2850_p7)
}
0x1c7a   :  { %2313 = dma.vmem_to_hbm [thread:$0]  %s2311_s17, 32, %s3343_s12, [#allocation6]  }
0x1c7b   :  { %s2887_s3 = smov [#allocation3]  }
0x1c7c   :  { %s2297_s5 = sshll.u32 %s2887_s3, 4  ;;  %s2298_s5 = int_to_ptr.vmem [resolvable:$true] %s2297_s5 }
0x1c7d   :  { %s2854_s25 = scalar_lea.vmem %s2298_s5, 256  ;;  %p2859_p9 = scmp.lt.s32.totalorder %s2298_s5, %s2298_s5 }
0x1c7e   :  { %p2855_p8 = scmp.ne.s32.totalorder %s2298_s5, %s2854_s25  ;;  %p2860_p10 = scmp.lt.s32.totalorder %s2854_s25, %s2854_s25 }
0x1c80   :  { %p2861_p11 = por %p2860_p10, %p2859_p9 }
0x1c82   :  { %p2862_p12 = pnand %p2861_p11, %p2855_p8 }
0x1d45   :  { %v2287_v2 = vpop.f32.mrb[22].mxu0 }
0x1d46   :  { %v2288_v9 = vadd.f32 %v2361_v13, %v2287_v2  ;;  %v2677_v30 = vpop.f32.mrb[23].mxu0 }
0x1d48   :  { %2291 = vst [vmem:[#allocation3 + $0x8] sm:$0xff] %v2288_v9 }
0x1d49   :  { %2865 = shalt.err (!%p2862_p12)
}
0x1d4a   :  { %s2866_s2 = scalar_lea.hbm %s3342_s11, 256 }
0x1d4b   :  { %p2867_p13 = scmp.ne.s32.totalorder %s3342_s11, %s2866_s2  ;;  %p2870_p0 = scmp.lt.u32.totalorder %s2866_s2, %s3342_s11 }
0x1d4d   :  { %p2872_p1 = pnand %p2870_p0, %p2867_p13 }
0x1d4f   :  { %2875 = shalt.err (!%p2872_p1)
}
0x1d50   :  { %s2888_s30 = smov 128   ;;  %s2889_s13 = smov 8  }
0x1d51   :  { %2303 = dma.vmem_to_hbm [thread:$0]  %s2298_s5, 256, %s3342_s11, [#allocation4], %s2888_s30, %s2888_s30, %s2889_s13  }
0x1d52   :  { %2876 = dma.done.wait [#allocation4], 256  }
0x1d53   :  { %2877 = vsyncadd [#allocation4], 4294967040 }
0x1d54   :  { %2878 = dma.done.wait [#allocation6], 32  }
0x1d55   :  { %2879 = vsyncadd [#allocation6], 4294967264 }
0x1d56   :  { %2320 = vsyncpa [#allocation4], 1 }
0x1d57   :  { %2321 = vsyncpa [#allocation6], 1 }

</bundles_post_ra>
